<compile_context>
chip_gen: v6e
topology: v6e:2x2x1
jax: 0.10.0
libtpu: 0.0.40
codegen_flags: <defaults>
</compile_context>

<pallas_src>
import functools

import jax
import jax.numpy as jnp
from jax.experimental import pallas as pl
from jax.experimental.pallas import tpu as pltpu


_LANE = 128


def _round_up(x, m):
    return (x + m - 1) // m * m


def _pick_tile(n, prefer):
    """Largest of {prefer, 1024, 512, 256, 128} that divides n (n is 256-aligned)."""
    for t in (prefer, 1024, 512, 256, 128):
        if t is not None and t <= n and n % t == 0:
            return t
    return n


def _graph_block_spec(tm, tk, buffer_count):
    """(tm, tk) int8 adjacency tile; >2-deep buffered when this Pallas supports it."""
    index_map = lambda i, k: (i, k)
    if buffer_count > 2 and hasattr(pl, "Buffered"):
        try:
            return pl.BlockSpec((tm, tk), index_map,
                                pipeline_mode=pl.Buffered(buffer_count))
        except TypeError:          # older BlockSpec without pipeline_mode kwarg
            pass
    return pl.BlockSpec((tm, tk), index_map)


# ---------------------------------------------------------------------------
# Pallas kernel 1: one bipartite half-step of LightGCN propagation.
#   E_new  = d_row^-1/2 * (A @ E_hat)          (A is 0/1 int8, E_hat is bf16,
#   sum   += E_new                              already scaled by d_col^-1/2)
#   E_hat' = d_row^-1/2 * E_new  (bf16)         pre-scaled input for next layer
# grid = (row_tiles, K_tiles); f32 accumulation in the grid-resident output.
# ---------------------------------------------------------------------------
def _propagate_kernel(g_ref, e_ref, sum_ref, d_ref, oe_ref, os_ref):
    k = pl.program_id(1)

    @pl.when(k == 0)
    def _():
        os_ref[...] = jnp.zeros_like(os_ref)

    # int8 0/1 tile -> bf16 (exact) -> MXU matmul with f32 accumulation.
    g = g_ref[...].astype(jnp.float32).astype(jnp.bfloat16)
    os_ref[...] += jnp.dot(g, e_ref[...], preferred_element_type=jnp.float32)

    @pl.when(k == pl.num_programs(1) - 1)
    def _():
        d = d_ref[...]                                   # (tm, 1) row d^-1/2
        e_new = os_ref[...] * d                          # E_{l+1} row tile (f32)
        os_ref[...] = sum_ref[...] + e_new               # fused layer-sum update
        oe_ref[...] = (e_new * d).astype(oe_ref.dtype)   # pre-scaled, bf16
        # TODO(synk): for D=64 pack oe/os into a single 128-lane output tile to
        # avoid masked partial stores (minor: one store per row tile).


def graph_propagate(adj_i8, emb_hat_bf16, sum_f32, d_inv_sqrt, *,
                    tm, tk, vmem_limit_bytes=None, graph_buffers=3):
    """Returns (next pre-scaled emb  bf16 (M, D),  new layer sum  f32 (M, D))."""
    M, K = adj_i8.shape
    Ke, D = emb_hat_bf16.shape
    assert Ke == K and M % tm == 0 and K % tk == 0
    assert sum_f32.shape == (M, D) and d_inv_sqrt.shape == (M, 1)

    return pl.pallas_call(
        _propagate_kernel,
        out_shape=(jax.ShapeDtypeStruct((M, D), jnp.bfloat16),
                   jax.ShapeDtypeStruct((M, D), jnp.float32)),
        grid_spec=pltpu.PrefetchScalarGridSpec(
            num_scalar_prefetch=0,
            grid=(M // tm, K // tk),
            in_specs=[
                _graph_block_spec(tm, tk, graph_buffers),        # int8 adjacency
                pl.BlockSpec((tk, D), lambda i, k: (k, 0)),      # streamed emb blk
                pl.BlockSpec((tm, D), lambda i, k: (i, 0)),      # layer-sum (in)
                pl.BlockSpec((tm, 1), lambda i, k: (i, 0)),      # row d^-1/2
            ],
            out_specs=[
                pl.BlockSpec((tm, D), lambda i, k: (i, 0)),      # next emb (bf16)
                pl.BlockSpec((tm, D), lambda i, k: (i, 0)),      # new layer sum
            ],
        ),
        input_output_aliases={2: 1},         # layer-sum updated in place
        compiler_params=pltpu.CompilerParams(
            # TODO(synk): on v7x use pltpu.CORE_PARALLEL (or pl.core_map) on the
            # row-tile axis so both TensorCores split the row range.
            dimension_semantics=("parallel", "arbitrary"),
            vmem_limit_bytes=vmem_limit_bytes,
        ),
    )(adj_i8, emb_hat_bf16, sum_f32, d_inv_sqrt)


# ---------------------------------------------------------------------------
# Pallas kernel 2: pairwise score  gamma[b] = sum_d u[b, d] * i[b, d]
#   inputs presented as (D, B_pad): reduction over sublanes, lane-dense (1, 128)
#   output tiles, grid over 128-wide batch tiles (scales to large eval batches).
# ---------------------------------------------------------------------------
def _score_kernel(u_ref, i_ref, o_ref):
    o_ref[...] = jnp.sum(u_ref[...] * i_ref[...], axis=0, keepdims=True)


def pairwise_score(users_emb, items_emb, *, tb=128):
    B, D = users_emb.shape
    Bp = _round_up(max(B, tb), tb)
    u_t = jnp.pad(users_emb, ((0, Bp - B), (0, 0))).T    # (D, Bp), B on lanes
    i_t = jnp.pad(items_emb, ((0, Bp - B), (0, 0))).T
    out = pl.pallas_call(
        _score_kernel,
        out_shape=jax.ShapeDtypeStruct((1, Bp), jnp.float32),
        grid=(Bp // tb,),
        in_specs=[pl.BlockSpec((D, tb), lambda b: (0, b)),
                  pl.BlockSpec((D, tb), lambda b: (0, b))],
        out_specs=pl.BlockSpec((1, tb), lambda b: (0, b)),
    )(u_t, i_t)
    # TODO(synk): for very large eval batches fuse the user/item row gathers into
    # this kernel via scalar-prefetched indices instead of the XLA gather above.
    return out[0, :B]


# ---------------------------------------------------------------------------
# Propagation loop (jitted once per model so the in-place sum aliasing and the
# Pallas calls live inside a single XLA computation).
# ---------------------------------------------------------------------------
def _computer_impl(R_i8, RT_i8, d_u, d_i, e_u, e_i, *,
                   n_layers, tm_u, tm_i, tk_u, tk_i, vmem_u, vmem_i,
                   graph_buffers):
    sum_u, sum_i = e_u, e_i                               # layer-0 term (f32)
    eu_hat = (e_u * d_u).astype(jnp.bfloat16)             # D_u^-1/2 E_u
    ei_hat = (e_i * d_i).astype(jnp.bfloat16)             # D_i^-1/2 E_i
    for _ in range(n_layers):
        new_eu_hat, new_sum_u = graph_propagate(
            R_i8, ei_hat, sum_u, d_u, tm=tm_u, tk=tk_i,
            vmem_limit_bytes=vmem_u, graph_buffers=graph_buffers)
        new_ei_hat, new_sum_i = graph_propagate(
            RT_i8, eu_hat, sum_i, d_i, tm=tm_i, tk=tk_u,
            vmem_limit_bytes=vmem_i, graph_buffers=graph_buffers)
        eu_hat, ei_hat = new_eu_hat, new_ei_hat
        sum_u, sum_i = new_sum_u, new_sum_i
    return sum_u, sum_i


# ---------------------------------------------------------------------------
# LightGCN module (parameters + graph built deterministically in-script)
# ---------------------------------------------------------------------------
class LightGCN:
    def __init__(self, num_users, num_items, latent_dim, n_layers, key,
                 *, tile_m=None, tile_k=None, density=0.1):
        self.num_users = num_users
        self.num_items = num_items
        self.latent_dim = latent_dim
        self.n_layers = n_layers

        ku, ki, kg = jax.random.split(key, 3)
        # nn.init.normal_(std=0.1) on both embedding tables
        self.embedding_user = 0.1 * jax.random.normal(
            ku, (num_users, latent_dim), jnp.float32)
        self.embedding_item = 0.1 * jax.random.normal(
            ki, (num_items, latent_dim), jnp.float32)

        # Synthetic bipartite interactions (stand-in for dataset.getSparseGraph()).
        R = (jax.random.uniform(kg, (num_users, num_items)) < density
             ).astype(jnp.float32)
        self._R01 = R                                     # reference only

        # Degrees of [[0, R], [R^T, 0]]  ->  d^-1/2  (inf -> 0, like the dataset).
        deg_u = jnp.sum(R, axis=1)
        deg_i = jnp.sum(R, axis=0)
        du = jnp.where(deg_u > 0, jax.lax.rsqrt(jnp.maximum(deg_u, 1e-12)), 0.0)
        di = jnp.where(deg_i > 0, jax.lax.rsqrt(jnp.maximum(deg_i, 1e-12)), 0.0)

        # Pad user / item counts to 256 multiples; padded rows/cols are zero and
        # carry d^-1/2 = 0, so they contribute nothing.
        self.u_pad = _round_up(num_users, 256)
        self.i_pad = _round_up(num_items, 256)
        R_pad = jnp.pad(R, ((0, self.u_pad - num_users),
                            (0, self.i_pad - num_items)))
        self.d_u = jnp.pad(du, (0, self.u_pad - num_users))[:, None]   # (u_pad, 1)
        self.d_i = jnp.pad(di, (0, self.i_pad - num_items))[:, None]   # (i_pad, 1)

        # 0/1 adjacency in int8; only the two rectangular bipartite blocks.
        # TODO(synk): for real datasets (N ~ 1e5+) switch to a CSR-style layout;
        # dense rectangular blocks are only viable at toy/medium scale.
        self.R_i8 = R_pad.astype(jnp.int8)                # (u_pad, i_pad)
        self.RT_i8 = R_pad.T.astype(jnp.int8)             # (i_pad, u_pad)

        # Tile sizes: biggest that divides the padded extents.  v5e/v6e (128 MiB
        # VMEM) default to 1024-row tiles, v7x (64 MiB) to 512.
        kind = jax.devices()[0].device_kind.lower()
        self._is_v7 = "v7" in kind
        prefer_m = tile_m if tile_m is not None else (512 if self._is_v7 else 1024)
        prefer_k = tile_k if tile_k is not None else 512
        self.tm_u = _pick_tile(self.u_pad, prefer_m)
        self.tm_i = _pick_tile(self.i_pad, prefer_m)
        self.tk_u = _pick_tile(self.u_pad, prefer_k)
        self.tk_i = _pick_tile(self.i_pad, prefer_k)

        # Lane-padding-aware VMEM budgets, capped per generation.
        vmem_cap = (56 << 20) if self._is_v7 else (100 << 20)
        self.vmem_u = self._vmem_budget(self.tm_u, self.tk_i, vmem_cap)
        self.vmem_i = self._vmem_budget(self.tm_i, self.tk_u, vmem_cap)

        # Probe 3-deep graph-tile buffering; fall back to default double buffering
        # on Pallas versions that reject pipeline_mode / Buffered.
        self._graph_buffers = 3
        try:
            probe = jax.jit(functools.partial(
                graph_propagate, tm=128, tk=128,
                vmem_limit_bytes=32 << 20, graph_buffers=3))(
                    jnp.zeros((128, 512), jnp.int8),
                    jnp.zeros((512, latent_dim), jnp.bfloat16),
                    jnp.zeros((128, latent_dim), jnp.float32),
                    jnp.zeros((128, 1), jnp.float32))
            jax.block_until_ready(probe)
        except Exception:
            self._graph_buffers = 2

        self._computer = jax.jit(functools.partial(
            _computer_impl, n_layers=self.n_layers,
            tm_u=self.tm_u, tm_i=self.tm_i, tk_u=self.tk_u, tk_i=self.tk_i,
            vmem_u=self.vmem_u, vmem_i=self.vmem_i,
            graph_buffers=self._graph_buffers))

        # TODO(synk): training-time graph dropout (__dropout_x / __dropadd_v*) is
        # not implemented; forward() uses the eval path (dropout disabled).

    def _vmem_budget(self, tm, tk, cap):
        d_lanes = _round_up(self.latent_dim, _LANE)       # lane padding of D<128
        need = (3 * tm * tk * 1                 # int8 graph tiles, Buffered(3)
                + 2 * tk * d_lanes * 2          # streamed emb blocks (bf16)
                + 2 * tm * d_lanes * 4          # layer-sum input tiles (f32)
                + 2 * tm * _LANE * 4            # d^-1/2 tiles (lane-padded)
                + 2 * tm * d_lanes * 2          # next-emb output tiles (bf16)
                + 2 * tm * d_lanes * 4)         # layer-sum output tiles (f32)
        return int(min(max(2 * need, 32 << 20), cap))

    def computer(self):
        e_u = jnp.pad(self.embedding_user,
                      ((0, self.u_pad - self.num_users), (0, 0)))
        e_i = jnp.pad(self.embedding_item,
                      ((0, self.i_pad - self.num_items), (0, 0)))
        sum_u, sum_i = self._computer(self.R_i8, self.RT_i8,
                                      self.d_u, self.d_i, e_u, e_i)
        scale = 1.0 / float(self.n_layers + 1)
        users = sum_u[: self.num_users] * scale
        items = sum_i[: self.num_items] * scale
        return users, items

    def forward(self, users, items):
        all_users, all_items = self.computer()
        users_emb = all_users[users]     # tiny gather (XLA glue)
        items_emb = all_items[items]     # tiny gather (XLA glue)
        return pairwise_score(users_emb, items_emb)   # Pallas mul + reduce


# ---------------------------------------------------------------------------
# References for correctness checks.
# ---------------------------------------------------------------------------
def _reference_forward_matched(model, users, items):
    """Mirrors the kernel's per-layer bf16 pre-scaling (tight-tolerance check)."""
    R = model._R01
    du = model.d_u[: model.num_users, :]
    di = model.d_i[: model.num_items, :]
    f32 = jnp.float32
    Eu, Ei = model.embedding_user, model.embedding_item
    sum_u, sum_i = Eu, Ei
    eu_hat = (Eu * du).astype(jnp.bfloat16).astype(f32)
    ei_hat = (Ei * di).astype(jnp.bfloat16).astype(f32)
    for _ in range(model.n_layers):
        ou = R @ ei_hat
        oi = R.T @ eu_hat
        eu_new = du * ou
        ei_new = di * oi
        sum_u = sum_u + eu_new
        sum_i = sum_i + ei_new
        eu_hat = (du * eu_new).astype(jnp.bfloat16).astype(f32)
        ei_hat = (di * ei_new).astype(jnp.bfloat16).astype(f32)
    lu = sum_u / float(model.n_layers + 1)
    li = sum_i / float(model.n_layers + 1)
    return jnp.sum(lu[users] * li[items], axis=1)


def _reference_forward_f32(model, users, items):
    """True f32 semantics of the PyTorch module (loose-tolerance sanity check)."""
    R = model._R01
    du = model.d_u[: model.num_users, :]
    di = model.d_i[: model.num_items, :]
    G_ui = du * R * di.T
    G_iu = G_ui.T
    Eu, Ei = model.embedding_user, model.embedding_item
    sum_u, sum_i = Eu, Ei
    for _ in range(model.n_layers):
        Eu, Ei = G_ui @ Ei, G_iu @ Eu
        sum_u = sum_u + Eu
        sum_i = sum_i + Ei
    lu = sum_u / float(model.n_layers + 1)
    li = sum_i / float(model.n_layers + 1)
    return jnp.sum(lu[users] * li[items], axis=1)


if __name__ == "__main__":
    key = jax.random.PRNGKey(0)
    kmodel, ku, ki = jax.random.split(key, 3)

    num_users, num_items = 100, 140      # padded to 256 x 256
    latent_dim, n_layers = 32, 3
    batch = 16

    # Small tiles so the toy graph exercises the multi-tile / padding paths;
    # production defaults pick 512/1024-wide tiles automatically per device.
    model = LightGCN(num_users, num_items, latent_dim, n_layers, kmodel,
                     tile_m=128, tile_k=128)

    users = jax.random.randint(ku, (batch,), 0, num_users)
    items = jax.random.randint(ki, (batch,), 0, num_items)

    gamma = jax.block_until_ready(model.forward(users, items))
    assert gamma.shape == (batch,)

    ref_q = _reference_forward_matched(model, users, items)
    assert jnp.allclose(gamma, ref_q, atol=1e-3, rtol=1e-2), (
        "matched-ref max err", float(jnp.max(jnp.abs(gamma - ref_q))))

    ref_f = _reference_forward_f32(model, users, items)
    assert jnp.allclose(gamma, ref_f, atol=2e-2, rtol=1e-1), (
        "f32-ref max err", float(jnp.max(jnp.abs(gamma - ref_f))))

    print("KERNEL_OK")
</pallas_src>

<mosaic_0001>
module attributes {stable_mosaic.version = 11 : i64} {
  func.func @_propagate_kernel(%arg0: i32, %arg1: i32, %arg2: memref<128x128xi8, #tpu.memory_space<vmem>>, %arg3: memref<128x32xbf16, #tpu.memory_space<vmem>>, %arg4: memref<128x32xf32, #tpu.memory_space<vmem>>, %arg5: memref<128x1xf32, #tpu.memory_space<vmem>>, %arg6: memref<128x32xbf16, #tpu.memory_space<vmem>>, %arg7: memref<128x32xf32, #tpu.memory_space<vmem>>) attributes {dimension_semantics = [#tpu.dimension_semantics<parallel>, #tpu.dimension_semantics<arbitrary>], iteration_bounds = array<i64: 2, 2>, scalar_prefetch = 0 : i64, scratch_operands = 0 : i64, tpu.core_type = #tpu.core_type<tc>, window_params = [{transform_indices = @transform_0, window_bounds = array<i64: 128, 128>}, {transform_indices = @transform_1, window_bounds = array<i64: 128, 32>}, {transform_indices = @transform_2, window_bounds = array<i64: 128, 32>}, {transform_indices = @transform_3, window_bounds = array<i64: 128, 1>}, {transform_indices = @transform_4, window_bounds = array<i64: 128, 32>}, {transform_indices = @transform_5, window_bounds = array<i64: 128, 32>}]} {
    %c0_i32 = arith.constant 0 : i32
    %0 = arith.cmpi eq, %arg1, %c0_i32 : i32
    %1 = arith.extui %0 : i1 to i32
    %c0_i32_0 = arith.constant 0 : i32
    %2 = arith.cmpi ne, %1, %c0_i32_0 : i32
    scf.if %2 {
      %cst_9 = arith.constant 0.000000e+00 : f32
      %14 = vector.broadcast %cst_9 : f32 to vector<128x32xf32>
      %c0_10 = arith.constant 0 : index
      %c0_11 = arith.constant 0 : index
      %15 = vector.load %arg7[%c0_10, %c0_11] : memref<128x32xf32, #tpu.memory_space<vmem>>, vector<128x32xf32>
      tpu.vector_store %arg7[%c0_10, %c0_11], %14 {strides = array<i32>} : memref<128x32xf32, #tpu.memory_space<vmem>>, vector<128x32xf32>,
    } else {
    }
    %c0 = arith.constant 0 : index
    %c0_1 = arith.constant 0 : index
    %3 = vector.load %arg2[%c0, %c0_1] : memref<128x128xi8, #tpu.memory_space<vmem>>, vector<128x128xi8>
    %4 = arith.sitofp %3 : vector<128x128xi8> to vector<128x128xf32>
    %5 = arith.truncf %4 : vector<128x128xf32> to vector<128x128xbf16>
    %c0_2 = arith.constant 0 : index
    %c0_3 = arith.constant 0 : index
    %6 = vector.load %arg7[%c0_2, %c0_3] : memref<128x32xf32, #tpu.memory_space<vmem>>, vector<128x32xf32>
    %c0_4 = arith.constant 0 : index
    %c0_5 = arith.constant 0 : index
    %7 = vector.load %arg3[%c0_4, %c0_5] : memref<128x32xbf16, #tpu.memory_space<vmem>>, vector<128x32xbf16>
    %cst = arith.constant dense<0.000000e+00> : vector<128x32xf32>
    %8 = tpu.matmul %5, %7, %cst {dimension_numbers = #tpu.dot_dimension_numbers<[1], [0], [0], [1], [0, 0, 1, 1], [], []>} : vector<128x128xbf16>, vector<128x32xbf16>, vector<128x32xf32> -> vector<128x32xf32>
    %9 = arith.addf %6, %8 : vector<128x32xf32>
    %c0_6 = arith.constant 0 : index
    %c0_7 = arith.constant 0 : index
    %10 = vector.load %arg7[%c0_6, %c0_7] : memref<128x32xf32, #tpu.memory_space<vmem>>, vector<128x32xf32>
    tpu.vector_store %arg7[%c0_6, %c0_7], %9 {strides = array<i32>} : memref<128x32xf32, #tpu.memory_space<vmem>>, vector<128x32xf32>,
    %c1_i32 = arith.constant 1 : i32
    %11 = arith.cmpi eq, %arg1, %c1_i32 : i32
    %12 = arith.extui %11 : i1 to i32
    %c0_i32_8 = arith.constant 0 : i32
    %13 = arith.cmpi ne, %12, %c0_i32_8 : i32
    scf.if %13 {
      %c0_9 = arith.constant 0 : index
      %c0_10 = arith.constant 0 : index
      %14 = vector.load %arg5[%c0_9, %c0_10] : memref<128x1xf32, #tpu.memory_space<vmem>>, vector<128x1xf32>
      %c0_11 = arith.constant 0 : index
      %c0_12 = arith.constant 0 : index
      %15 = vector.load %arg7[%c0_11, %c0_12] : memref<128x32xf32, #tpu.memory_space<vmem>>, vector<128x32xf32>
      %16 = vector.broadcast %14 : vector<128x1xf32> to vector<128x32xf32>
      %17 = arith.mulf %15, %16 : vector<128x32xf32>
      %c0_13 = arith.constant 0 : index
      %c0_14 = arith.constant 0 : index
      %18 = vector.load %arg4[%c0_13, %c0_14] : memref<128x32xf32, #tpu.memory_space<vmem>>, vector<128x32xf32>
      %19 = arith.addf %18, %17 : vector<128x32xf32>
      %c0_15 = arith.constant 0 : index
      %c0_16 = arith.constant 0 : index
      %20 = vector.load %arg7[%c0_15, %c0_16] : memref<128x32xf32, #tpu.memory_space<vmem>>, vector<128x32xf32>
      tpu.vector_store %arg7[%c0_15, %c0_16], %19 {strides = array<i32>} : memref<128x32xf32, #tpu.memory_space<vmem>>, vector<128x32xf32>,
      %21 = vector.broadcast %14 : vector<128x1xf32> to vector<128x32xf32>
      %22 = arith.mulf %17, %21 : vector<128x32xf32>
      %23 = arith.truncf %22 : vector<128x32xf32> to vector<128x32xbf16>
      %c0_17 = arith.constant 0 : index
      %c0_18 = arith.constant 0 : index
      %24 = vector.load %arg6[%c0_17, %c0_18] : memref<128x32xbf16, #tpu.memory_space<vmem>>, vector<128x32xbf16>
      tpu.vector_store %arg6[%c0_17, %c0_18], %23 {strides = array<i32>} : memref<128x32xbf16, #tpu.memory_space<vmem>>, vector<128x32xbf16>,
    } else {
    }
    return
  }
  func.func @transform_0(%arg0: i32, %arg1: i32) -> (i32, i32) {
    %c0_i32 = arith.constant 0 : i32
    return %arg0, %arg1 : i32, i32
  }
  func.func @transform_1(%arg0: i32, %arg1: i32) -> (i32, i32) {
    %c0_i32 = arith.constant 0 : i32
    %c0_i32_0 = arith.constant 0 : i32
    return %arg1, %c0_i32 : i32, i32
  }
  func.func @transform_2(%arg0: i32, %arg1: i32) -> (i32, i32) {
    %c0_i32 = arith.constant 0 : i32
    %c0_i32_0 = arith.constant 0 : i32
    return %arg0, %c0_i32 : i32, i32
  }
  func.func @transform_3(%arg0: i32, %arg1: i32) -> (i32, i32) {
    %c0_i32 = arith.constant 0 : i32
    %c0_i32_0 = arith.constant 0 : i32
    return %arg0, %c0_i32 : i32, i32
  }
  func.func @transform_4(%arg0: i32, %arg1: i32) -> (i32, i32) {
    %c0_i32 = arith.constant 0 : i32
    %c0_i32_0 = arith.constant 0 : i32
    return %arg0, %c0_i32 : i32, i32
  }
  func.func @transform_5(%arg0: i32, %arg1: i32) -> (i32, i32) {
    %c0_i32 = arith.constant 0 : i32
    %c0_i32_0 = arith.constant 0 : i32
    return %arg0, %c0_i32 : i32, i32
  }
}

module attributes {stable_mosaic.version = 11 : i64} {
  func.func @_propagate_kernel(%arg0: i32, %arg1: i32, %arg2: memref<128x128xi8, #tpu.memory_space<vmem>>, %arg3: memref<128x32xbf16, #tpu.memory_space<vmem>>, %arg4: memref<128x32xf32, #tpu.memory_space<vmem>>, %arg5: memref<128x1xf32, #tpu.memory_space<vmem>>, %arg6: memref<128x32xbf16, #tpu.memory_space<vmem>>, %arg7: memref<128x32xf32, #tpu.memory_space<vmem>>) attributes {dimension_semantics = [#tpu.dimension_semantics<parallel>, #tpu.dimension_semantics<arbitrary>], iteration_bounds = array<i64: 2, 2>, scalar_prefetch = 0 : i64, scratch_operands = 0 : i64, tpu.core_type = #tpu.core_type<tc>, window_params = [{transform_indices = @transform_0, window_bounds = array<i64: 128, 128>}, {transform_indices = @transform_1, window_bounds = array<i64: 128, 32>}, {transform_indices = @transform_2, window_bounds = array<i64: 128, 32>}, {transform_indices = @transform_3, window_bounds = array<i64: 128, 1>}, {transform_indices = @transform_4, window_bounds = array<i64: 128, 32>}, {transform_indices = @transform_5, window_bounds = array<i64: 128, 32>}]} {
    %c0_i32 = arith.constant 0 : i32
    %0 = arith.cmpi eq, %arg1, %c0_i32 : i32
    %1 = arith.extui %0 : i1 to i32
    %c0_i32_0 = arith.constant 0 : i32
    %2 = arith.cmpi ne, %1, %c0_i32_0 : i32
    scf.if %2 {
      %cst_9 = arith.constant 0.000000e+00 : f32
      %14 = vector.broadcast %cst_9 : f32 to vector<128x32xf32>
      %c0_10 = arith.constant 0 : index
      %c0_11 = arith.constant 0 : index
      %15 = vector.load %arg7[%c0_10, %c0_11] : memref<128x32xf32, #tpu.memory_space<vmem>>, vector<128x32xf32>
      tpu.vector_store %arg7[%c0_10, %c0_11], %14 {strides = array<i32>} : memref<128x32xf32, #tpu.memory_space<vmem>>, vector<128x32xf32>,
    } else {
    }
    %c0 = arith.constant 0 : index
    %c0_1 = arith.constant 0 : index
    %3 = vector.load %arg2[%c0, %c0_1] : memref<128x128xi8, #tpu.memory_space<vmem>>, vector<128x128xi8>
    %4 = arith.sitofp %3 : vector<128x128xi8> to vector<128x128xf32>
    %5 = arith.truncf %4 : vector<128x128xf32> to vector<128x128xbf16>
    %c0_2 = arith.constant 0 : index
    %c0_3 = arith.constant 0 : index
    %6 = vector.load %arg7[%c0_2, %c0_3] : memref<128x32xf32, #tpu.memory_space<vmem>>, vector<128x32xf32>
    %c0_4 = arith.constant 0 : index
    %c0_5 = arith.constant 0 : index
    %7 = vector.load %arg3[%c0_4, %c0_5] : memref<128x32xbf16, #tpu.memory_space<vmem>>, vector<128x32xbf16>
    %cst = arith.constant dense<0.000000e+00> : vector<128x32xf32>
    %8 = tpu.matmul %5, %7, %cst {dimension_numbers = #tpu.dot_dimension_numbers<[1], [0], [0], [1], [0, 0, 1, 1], [], []>} : vector<128x128xbf16>, vector<128x32xbf16>, vector<128x32xf32> -> vector<128x32xf32>
    %9 = arith.addf %6, %8 : vector<128x32xf32>
    %c0_6 = arith.constant 0 : index
    %c0_7 = arith.constant 0 : index
    %10 = vector.load %arg7[%c0_6, %c0_7] : memref<128x32xf32, #tpu.memory_space<vmem>>, vector<128x32xf32>
    tpu.vector_store %arg7[%c0_6, %c0_7], %9 {strides = array<i32>} : memref<128x32xf32, #tpu.memory_space<vmem>>, vector<128x32xf32>,
    %c1_i32 = arith.constant 1 : i32
    %11 = arith.cmpi eq, %arg1, %c1_i32 : i32
    %12 = arith.extui %11 : i1 to i32
    %c0_i32_8 = arith.constant 0 : i32
    %13 = arith.cmpi ne, %12, %c0_i32_8 : i32
    scf.if %13 {
      %c0_9 = arith.constant 0 : index
      %c0_10 = arith.constant 0 : index
      %14 = vector.load %arg5[%c0_9, %c0_10] : memref<128x1xf32, #tpu.memory_space<vmem>>, vector<128x1xf32>
      %c0_11 = arith.constant 0 : index
      %c0_12 = arith.constant 0 : index
      %15 = vector.load %arg7[%c0_11, %c0_12] : memref<128x32xf32, #tpu.memory_space<vmem>>, vector<128x32xf32>
      %16 = vector.broadcast %14 : vector<128x1xf32> to vector<128x32xf32>
      %17 = arith.mulf %15, %16 : vector<128x32xf32>
      %c0_13 = arith.constant 0 : index
      %c0_14 = arith.constant 0 : index
      %18 = vector.load %arg4[%c0_13, %c0_14] : memref<128x32xf32, #tpu.memory_space<vmem>>, vector<128x32xf32>
      %19 = arith.addf %18, %17 : vector<128x32xf32>
      %c0_15 = arith.constant 0 : index
      %c0_16 = arith.constant 0 : index
      %20 = vector.load %arg7[%c0_15, %c0_16] : memref<128x32xf32, #tpu.memory_space<vmem>>, vector<128x32xf32>
      tpu.vector_store %arg7[%c0_15, %c0_16], %19 {strides = array<i32>} : memref<128x32xf32, #tpu.memory_space<vmem>>, vector<128x32xf32>,
      %21 = vector.broadcast %14 : vector<128x1xf32> to vector<128x32xf32>
      %22 = arith.mulf %17, %21 : vector<128x32xf32>
      %23 = arith.truncf %22 : vector<128x32xf32> to vector<128x32xbf16>
      %c0_17 = arith.constant 0 : index
      %c0_18 = arith.constant 0 : index
      %24 = vector.load %arg6[%c0_17, %c0_18] : memref<128x32xbf16, #tpu.memory_space<vmem>>, vector<128x32xbf16>
      tpu.vector_store %arg6[%c0_17, %c0_18], %23 {strides = array<i32>} : memref<128x32xbf16, #tpu.memory_space<vmem>>, vector<128x32xbf16>,
    } else {
    }
    return
  }
  func.func @transform_0(%arg0: i32, %arg1: i32) -> (i32, i32) {
    %c0_i32 = arith.constant 0 : i32
    return %arg0, %arg1 : i32, i32
  }
  func.func @transform_1(%arg0: i32, %arg1: i32) -> (i32, i32) {
    %c0_i32 = arith.constant 0 : i32
    %c0_i32_0 = arith.constant 0 : i32
    return %arg1, %c0_i32 : i32, i32
  }
  func.func @transform_2(%arg0: i32, %arg1: i32) -> (i32, i32) {
    %c0_i32 = arith.constant 0 : i32
    %c0_i32_0 = arith.constant 0 : i32
    return %arg0, %c0_i32 : i32, i32
  }
  func.func @transform_3(%arg0: i32, %arg1: i32) -> (i32, i32) {
    %c0_i32 = arith.constant 0 : i32
    %c0_i32_0 = arith.constant 0 : i32
    return %arg0, %c0_i32 : i32, i32
  }
  func.func @transform_4(%arg0: i32, %arg1: i32) -> (i32, i32) {
    %c0_i32 = arith.constant 0 : i32
    %c0_i32_0 = arith.constant 0 : i32
    return %arg0, %c0_i32 : i32, i32
  }
  func.func @transform_5(%arg0: i32, %arg1: i32) -> (i32, i32) {
    %c0_i32 = arith.constant 0 : i32
    %c0_i32_0 = arith.constant 0 : i32
    return %arg0, %c0_i32 : i32, i32
  }
}

</mosaic_0001>

<bundles_post_ra>
// kernel: _computer_impl.7
= control target key start
LH: loop header
LB: loop body
LE: loop exit
PB: predicated region body
PF: predicated region fallthrough
CT: control target
= control target key end

     0   :  { %s1323_s18 = smov 0   ;;  %s1325_s19 = smov 0   ;;  %s1666_s0 = inlined_call_operand.vmem [shape: s8[256,256], index: 0, kind: input, shape index: {}]   ;;  %s1667_s1 = inlined_call_operand.vmem [shape: bf16[256,32], index: 1, kind: input, shape index: {}]   ;;  %s1668_s2 = inlined_call_operand.vmem [shape: f32[256,32], index: 2, kind: input, shape index: {}, may-alias: {2,5}]   ;;  %s1669_s3 = inlined_call_operand.vmem [shape: f32[256,1], index: 3, kind: input, shape index: {}]   ;;  %s1670_s4 = inlined_call_operand.vmem [shape: bf16[256,32], index: 4, kind: output, shape index: {0}]   ;;  %s1671_s5 = inlined_call_operand.vmem [shape: f32[256,32], index: 5, kind: output, shape index: {1}, may-alias: {2,5}]  }
   0x1   :  { %s1327_s20 = smov 0   ;;  %s1329_s21 = smov 0  }
   0x2   :  { %s1331_s22 = smov 0   ;;  %s1333_s23 = smov 0  }
   0x3   :  { %s1335_s24 = smov 0  }
   0x4 LB: > { %s25_s25 = sadd.s32 1, %s1281_s22  ;;  %s28_s26 = sadd.s32 1, %s1285_s23  ;;  %s1289_s24 = sphi %s1335_s24, %s16_s24   ;;  %s1285_s23 = sphi %s1333_s23, %s1677_s23   ;;  %s1281_s22 = sphi %s1331_s22, %s1676_s22   ;;  %s1277_s21 = sphi %s1329_s21, %s1675_s21   ;;  %s1273_s20 = sphi %s1327_s20, %s1674_s20   ;;  %s1269_s19 = sphi %s1325_s19, %s1673_s19   ;;  %s1265_s18 = sphi %s1323_s18, %s1672_s18  }
   0x5   : > { %p26_p0 = scmp.ge.s32.totalorder %s25_s25, 2  ;;  %p44_p1 = scmp.ne.s32.totalorder %s1269_s19, %s1265_s18 }
   0x6   : > { %p45_p2 = scmp.eq.s32.totalorder %s1289_s24, 0  ;;  %s37_s30 = sadd.s32 1, %s1269_s19 }
   0x7   : > { %s1679_s25 = smov (%p26_p0, %s25_s25), 0  ;;  %s1681_s26 = smov (!%p26_p0, %s28_s26), %s1285_s23 }
   0x8   : > { %p46_p3 = por %p45_p2, %p44_p1  ;;  %p30_p4 = scmp.ge.s32.totalorder %s1681_s26, 2 }
   0x9   : > { %s33_s27 = ssub.s32 %s1281_s22, %s1679_s25  ;;  %p1041_p6 = scmp.ge.s32.totalorder %s1289_s24, 4 }
   0xa   : > { %s1683_s26 = smov (%p30_p4, %s1681_s26), 0 }
   0xb   : > { %s32_s28 = ssub.s32 %s1285_s23, %s1683_s26  ;;  %200 = sbr.rel (%p1041_p6) target bundleno = 24 (0x18), region = 16 }
   0xc   : > { %s34_s29 = sor.u32 %s33_s27, %s32_s28 }
   0xd   : > { %p35_p5 = scmp.eq.s32.totalorder %s34_s29, 0 }
   0xf   : > { %s1374_s6 = scalar_select %p35_p5, %s1269_s19, %s37_s30  }
  0x10   : > { %203 = sbr.rel (!%p46_p3) target bundleno = 24 (0x18), region = 20  ;;  %s205_s7 = sand.u32 (%p46_p3), 1, %s1269_s19  }
  0x11   : > { %s1086_s8 = sshll.u32 (%p46_p3), %s1285_s23, 3  ;;  %s1042_s9 = sshll.u32 (%p46_p3), %s205_s7, 5 }
  0x12   : > { %s210_s10 = sadd.s32 (%p46_p3), %s1281_s22, %s1086_s8  ;;  %s207_s15 = scalar_lea.vmem (%p46_p3), [#allocation2], %s1042_s9 }
  0x13   : > { %s1045_s11 = sshll.u32 (%p46_p3), %s210_s10, 3 }
  0x14   : > { %s212_s14 = scalar_lea.vmem (%p46_p3), %s1666_s0, %s1045_s11 }
  0x15   : > { %v247_v0 = vld [vmem:[%s212_s14] sm:$0xff]  ;;  %v249_v1 = vld [vmem:[%s212_s14 + $0x10] sm:$0xff] }
  0x16   : > { %v251_v2 = vld [vmem:[%s212_s14 + $0x20] sm:$0xff]  ;;  %248 = vst [vmem:[%s207_s15] sm:$0xff] %v247_v0  ;;  %250 = vst [vmem:[%s207_s15 + $0x8] sm:$0xff] %v249_v1  ;;  %v253_v3 = vld [vmem:[%s212_s14 + $0x30] sm:$0xff] }
  0x17   : > { %252 = vst [vmem:[%s207_s15 + $0x10] sm:$0xff] %v251_v2  ;;  %254 = vst [vmem:[%s207_s15 + $0x18] sm:$0xff] %v253_v3 }
  0x18 PF: > { %p1046_p7 = scmp.ge.s32.totalorder %s1289_s24, 1  ;;  %p286_p8 = scmp.lt.s32.totalorder %s1289_s24, 5 }
  0x1a   : > { %p287_p9 = pnand %p1046_p7, %p286_p8 }
  0x1b   : > { %s293_s16 = sand.u32 (!%p287_p9), 1, %s1265_s18   ;;  %s1048_s17 = sshll.u32 (!%p287_p9), %s1273_s20, 4 }
  0x1c   : > { %290 = sbr.rel (%p287_p9) target bundleno = 457 (0x1c9), region = 70  ;;  %s1047_s27 = sshll.u32 (!%p287_p9), %s293_s16, 5 }
  0x1d   : > { %p342_p10 = scmp.lt.s32.totalorder (!%p287_p9), %s1048_s17, 31  ;;  %s1050_s28 = sshll.u32 (!%p287_p9), %s1277_s21, 4 }
  0x1e   : > { %p348_p11 = scmp.lt.s32.totalorder (!%p287_p9), %s1050_s28, 31  ;;  %p1058_p12 = scmp.ne.s32.totalorder (!%p287_p9), %s1273_s20, 0 }
  0x21   : > { %s1685_s17 = smov (!%p342_p10, %s1048_s17), 31  ;;  %s1687_s28 = smov (!%p348_p11, %s1050_s28), 31 }
  0x22   : > { %s1049_s29 = sshll.u32 %s1685_s17, 2  ;;  %s1051_s9 = sshll.u32 %s1687_s28, 3 }
  0x23   : > { %s1391_s8 = scalar_lea.vmem %s1667_s1, %s1049_s29  ;;  %s1055_s10 = sshll.u32 %s1687_s28, 2 }
  0x24   : > { %s1396_s13 = scalar_lea.vmem %s1668_s2, %s1051_s9  ;;  %s1401_s21 = scalar_lea.vmem %s1669_s3, %s1051_s9 }
  0x25   : > { %s1406_s17 = scalar_lea.vmem %s1670_s4, %s1055_s10  ;;  %s1411_s7 = scalar_lea.vmem %s1671_s5, %s1051_s9 }
  0x26   : > { %s1413_s28 = scalar_lea.vmem [#allocation2], %s1047_s27  ;;  %375 = sbr.rel (%p1058_p12) target bundleno = 52 (0x34), region = 78 }
  0x2b   : > { %vm376_vm0 = vcmask 261120   ;;  %v1291_v4 = vmov 0.0  }
  0x2c   : > { %377 = vst.msk [vmem:[%s1411_s7] sm:$0xff] %vm376_vm0, %v1291_v4  ;;  %378 = vst.msk [vmem:[%s1411_s7 + $0x8] sm:$0xff] %vm376_vm0, %v1291_v4 }
  0x2d   : > { %379 = vst.msk [vmem:[%s1411_s7 + $0x10] sm:$0xff] %vm376_vm0, %v1291_v4  ;;  %380 = vst.msk [vmem:[%s1411_s7 + $0x18] sm:$0xff] %vm376_vm0, %v1291_v4 }
  0x2e   : > { %381 = vst.msk [vmem:[%s1411_s7 + $0x20] sm:$0xff] %vm376_vm0, %v1291_v4  ;;  %382 = vst.msk [vmem:[%s1411_s7 + $0x28] sm:$0xff] %vm376_vm0, %v1291_v4 }
  0x2f   : > { %383 = vst.msk [vmem:[%s1411_s7 + $0x30] sm:$0xff] %vm376_vm0, %v1291_v4  ;;  %384 = vst.msk [vmem:[%s1411_s7 + $0x38] sm:$0xff] %vm376_vm0, %v1291_v4 }
  0x30   : > { %385 = vst.msk [vmem:[%s1411_s7 + $0x40] sm:$0xff] %vm376_vm0, %v1291_v4  ;;  %386 = vst.msk [vmem:[%s1411_s7 + $0x48] sm:$0xff] %vm376_vm0, %v1291_v4 }
  0x31   : > { %387 = vst.msk [vmem:[%s1411_s7 + $0x50] sm:$0xff] %vm376_vm0, %v1291_v4  ;;  %388 = vst.msk [vmem:[%s1411_s7 + $0x58] sm:$0xff] %vm376_vm0, %v1291_v4 }
  0x32   : > { %389 = vst.msk [vmem:[%s1411_s7 + $0x60] sm:$0xff] %vm376_vm0, %v1291_v4  ;;  %390 = vst.msk [vmem:[%s1411_s7 + $0x68] sm:$0xff] %vm376_vm0, %v1291_v4 }
  0x33   : > { %391 = vst.msk [vmem:[%s1411_s7 + $0x70] sm:$0xff] %vm376_vm0, %v1291_v4  ;;  %392 = vst.msk [vmem:[%s1411_s7 + $0x78] sm:$0xff] %vm376_vm0, %v1291_v4 }
  0x34 PF: > { %v1225_v5 = vld [vmem:[%s1391_s8 + $0x38] sm:$0xff]   ;;  %v1226_v6 = vld [vmem:[%s1391_s8 + $0x30] sm:$0xff]   ;;  %v1227_v7 = vld [vmem:[%s1391_s8 + $0x28] sm:$0xff]   ;;  %vm598_vm1 = vcmask 261120   ;;  %p1067_p13 = scmp.ne.s32.totalorder %s1273_s20, 1 }
  0x35   : > { %1119 = vmatprep.subr.bf16.mxu0 %v1225_v5  ;;  %1151 = vmatprep.subr.bf16.mxu1 %v1225_v5  ;;  %v1228_v8 = vld [vmem:[%s1391_s8 + $0x20] sm:$0xff]   ;;  %v395_v10 = vld [vmem:[%s1413_s28 + $0x10] sm:$0xff]  ;;  %v1229_v13 = vld [vmem:[%s1391_s8 + $0x18] sm:$0xff]  }
  0x36   : > { %1120 = vmatpush3.bf16.msra.mxu0 %v1225_v5  ;;  %1159 = vmatpush3.bf16.msra.mxu1 %v1225_v5  ;;  %v393_v9 = vld [vmem:[%s1413_s28] sm:$0xff]  ;;  %v401_v12 = vunpack.c.l.s8.bf16 %v395_v10  ;;  %v1230_v14 = vld [vmem:[%s1391_s8 + $0x10] sm:$0xff]   ;;  %v1231_v15 = vld [vmem:[%s1391_s8 + $0x8] sm:$0xff]   ;;  %v402_v20 = vunpack.c.h.s8.bf16 %v395_v10 }
  0x37   : > { %1121 = vmatprep.subr.bf16.mxu0 %v1226_v6  ;;  %1152 = vmatprep.subr.bf16.mxu1 %v1226_v6  ;;  %v397_v11 = vunpack.c.l.s8.bf16 %v393_v9  ;;  %v1232_v16 = vld [vmem:[%s1391_s8] sm:$0xff]   ;;  %v394_v17 = vld [vmem:[%s1413_s28 + $0x8] sm:$0xff]  ;;  %v396_v18 = vld [vmem:[%s1413_s28 + $0x18] sm:$0xff]  ;;  %v398_v19 = vunpack.c.h.s8.bf16 %v393_v9 }
  0x38   : > { %1143 = vmatprep.mubr.bf16.mxu1 %v401_v12  ;;  %v399_v21 = vunpack.c.l.s8.bf16 %v394_v17  ;;  %v403_v22 = vunpack.c.l.s8.bf16 %v396_v18  ;;  %v400_v23 = vunpack.c.h.s8.bf16 %v394_v17  ;;  %v404_v24 = vunpack.c.h.s8.bf16 %v396_v18  ;;  %v407_v25 = vld [vmem:[%s1411_s7 + $0x10] sm:$0xff]  ;;  %v405_v29 = vld [vmem:[%s1411_s7] sm:$0xff]  ;;  %v408_v35 = vld [vmem:[%s1411_s7 + $0x18] sm:$0xff] }
  0x39   : > { %1135 = vmatprep.mubr.bf16.mxu0 %v397_v11  ;;  %v415_v26 = vld [vmem:[%s1411_s7 + $0x50] sm:$0xff]  ;;  %v413_v30 = vld [vmem:[%s1411_s7 + $0x40] sm:$0xff]  ;;  %v416_v36 = vld [vmem:[%s1411_s7 + $0x58] sm:$0xff] }
  0x3a   : > { %1122 = vmatpush3.bf16.msra.mxu0 %v1226_v6  ;;  %1160 = vmatpush3.bf16.msra.mxu1 %v1226_v6  ;;  %v406_v41 = vld [vmem:[%s1411_s7 + $0x8] sm:$0xff]  ;;  %v411_v47 = vld [vmem:[%s1411_s7 + $0x30] sm:$0xff]  ;;  %v409_v53 = vld [vmem:[%s1411_s7 + $0x20] sm:$0xff] }
  0x3b   : > { %1123 = vmatprep.subr.bf16.mxu0 %v1227_v7  ;;  %1153 = vmatprep.subr.bf16.mxu1 %v1227_v7  ;;  %v414_v42 = vld [vmem:[%s1411_s7 + $0x48] sm:$0xff]  ;;  %v419_v48 = vld [vmem:[%s1411_s7 + $0x70] sm:$0xff]  ;;  %v417_v54 = vld [vmem:[%s1411_s7 + $0x60] sm:$0xff] }
  0x3c   : > { %v412_v59 = vld [vmem:[%s1411_s7 + $0x38] sm:$0xff]  ;;  %v410_v1 = vld [vmem:[%s1411_s7 + $0x28] sm:$0xff] }
  0x3d   : > { %v420_v60 = vld [vmem:[%s1411_s7 + $0x78] sm:$0xff]  ;;  %v418_v2 = vld [vmem:[%s1411_s7 + $0x68] sm:$0xff] }
  0x3e   : > { %1124 = vmatpush3.bf16.msra.mxu0 %v1227_v7  ;;  %1161 = vmatpush3.bf16.msra.mxu1 %v1227_v7 }
  0x3f   : > { %1125 = vmatprep.subr.bf16.mxu0 %v1228_v8  ;;  %1154 = vmatprep.subr.bf16.mxu1 %v1228_v8 }
  0x42   : > { %1126 = vmatpush3.bf16.msra.mxu0 %v1228_v8  ;;  %1162 = vmatpush3.bf16.msra.mxu1 %v1228_v8 }
  0x43   : > { %1127 = vmatprep.subr.bf16.mxu0 %v1229_v13  ;;  %1155 = vmatprep.subr.bf16.mxu1 %v1229_v13 }
  0x46   : > { %1128 = vmatpush3.bf16.msra.mxu0 %v1229_v13  ;;  %1163 = vmatpush3.bf16.msra.mxu1 %v1229_v13 }
  0x47   : > { %1129 = vmatprep.subr.bf16.mxu0 %v1230_v14  ;;  %1156 = vmatprep.subr.bf16.mxu1 %v1230_v14 }
  0x4a   : > { %1130 = vmatpush3.bf16.msra.mxu0 %v1230_v14  ;;  %1164 = vmatpush3.bf16.msra.mxu1 %v1230_v14 }
  0x4b   : > { %1131 = vmatprep.subr.bf16.mxu0 %v1231_v15  ;;  %1157 = vmatprep.subr.bf16.mxu1 %v1231_v15 }
  0x4e   : > { %1132 = vmatpush3.bf16.msra.mxu0 %v1231_v15  ;;  %1165 = vmatpush3.bf16.msra.mxu1 %v1231_v15 }
  0x4f   : > { %1133 = vmatprep.subr.bf16.mxu0 %v1232_v16  ;;  %1158 = vmatprep.subr.bf16.mxu1 %v1232_v16 }
  0x52   : > { %1134 = vmatpush3.bf16.msra.mxu0 %v1232_v16  ;;  %1166 = vmatpush3.bf16.msra.mxu1 %v1232_v16 }
  0x55   : > { %1136 = vmatmul.mubr.bf16.vlgmr.msra.gmra.mxu0 %v398_v19  ;;  %1144 = vmatmul.mubr.bf16.vlgmr.msra.gmra.mxu1 %v402_v20 }
  0x56   : > { %1139 = vmatprep.mubr.bf16.mxu0 %v399_v21  ;;  %1147 = vmatprep.mubr.bf16.mxu1 %v403_v22 }
  0x5d   : > { %1140 = vmatmul.mubr.bf16.gmra.mxu0 %v400_v23  ;;  %1148 = vmatmul.mubr.bf16.gmra.mxu1 %v404_v24 }
 0x115   : > { %v1137_v27 = vpop.f32.mrf.mxu0  ;;  %v1145_v28 = vpop.f32.mrf.mxu1 }
 0x116   : > { %v584_v31 = vadd.f32 %v1137_v27, %v407_v25  ;;  %v592_v32 = vadd.f32 %v1145_v28, %v415_v26 }
 0x117   : > { %v519_v33 = vpop.f32.mrf.mxu0  ;;  %v551_v34 = vpop.f32.mrf.mxu1 }
 0x118   : > { %601 = vst.msk [vmem:[%s1411_s7 + $0x10] sm:$0xff] %vm598_vm1, %v584_v31  ;;  %609 = vst.msk [vmem:[%s1411_s7 + $0x50] sm:$0xff] %vm598_vm1, %v592_v32  ;;  %v582_v37 = vadd.f32 %v519_v33, %v405_v29  ;;  %v590_v38 = vadd.f32 %v551_v34, %v413_v30 }
 0x119   : > { %v1138_v39 = vpop.f32.mrf.mxu0  ;;  %v1146_v40 = vpop.f32.mrf.mxu1 }
 0x11a   : > { %599 = vst.msk [vmem:[%s1411_s7] sm:$0xff] %vm598_vm1, %v582_v37  ;;  %607 = vst.msk [vmem:[%s1411_s7 + $0x40] sm:$0xff] %vm598_vm1, %v590_v38  ;;  %v585_v43 = vadd.f32 %v1138_v39, %v408_v35  ;;  %v593_v44 = vadd.f32 %v1146_v40, %v416_v36 }
 0x11b   : > { %v522_v45 = vpop.f32.mrf.mxu0  ;;  %v554_v46 = vpop.f32.mrf.mxu1 }
 0x11c   : > { %602 = vst.msk [vmem:[%s1411_s7 + $0x18] sm:$0xff] %vm598_vm1, %v585_v43  ;;  %610 = vst.msk [vmem:[%s1411_s7 + $0x58] sm:$0xff] %vm598_vm1, %v593_v44  ;;  %v583_v49 = vadd.f32 %v522_v45, %v406_v41  ;;  %v591_v50 = vadd.f32 %v554_v46, %v414_v42 }
 0x11d   : > { %v1141_v51 = vpop.f32.mrf.mxu0  ;;  %v1149_v52 = vpop.f32.mrf.mxu1 }
 0x11e   : > { %600 = vst.msk [vmem:[%s1411_s7 + $0x8] sm:$0xff] %vm598_vm1, %v583_v49  ;;  %608 = vst.msk [vmem:[%s1411_s7 + $0x48] sm:$0xff] %vm598_vm1, %v591_v50  ;;  %v588_v55 = vadd.f32 %v1141_v51, %v411_v47  ;;  %v596_v56 = vadd.f32 %v1149_v52, %v419_v48 }
 0x11f   : > { %v535_v57 = vpop.f32.mrf.mxu0  ;;  %v567_v58 = vpop.f32.mrf.mxu1 }
 0x120   : > { %605 = vst.msk [vmem:[%s1411_s7 + $0x30] sm:$0xff] %vm598_vm1, %v588_v55  ;;  %613 = vst.msk [vmem:[%s1411_s7 + $0x70] sm:$0xff] %vm598_vm1, %v596_v56  ;;  %v586_v61 = vadd.f32 %v535_v57, %v409_v53  ;;  %v594_v62 = vadd.f32 %v567_v58, %v417_v54 }
 0x121   : > { %v1142_v63 = vpop.f32.mrf.mxu0  ;;  %v1150_v0 = vpop.f32.mrf.mxu1 }
 0x122   : > { %603 = vst.msk [vmem:[%s1411_s7 + $0x20] sm:$0xff] %vm598_vm1, %v586_v61  ;;  %611 = vst.msk [vmem:[%s1411_s7 + $0x60] sm:$0xff] %vm598_vm1, %v594_v62  ;;  %v589_v3 = vadd.f32 %v1142_v63, %v412_v59  ;;  %v597_v4 = vadd.f32 %v1150_v0, %v420_v60  ;;  %618 = sbr.rel (%p1067_p13) target bundleno = 457 (0x1c9), region = 82 }
 0x123   : > { %v538_v5 = vpop.f32.mrf.mxu0  ;;  %v570_v6 = vpop.f32.mrf.mxu1 }
 0x124   : > { %606 = vst.msk [vmem:[%s1411_s7 + $0x38] sm:$0xff] %vm598_vm1, %v589_v3  ;;  %614 = vst.msk [vmem:[%s1411_s7 + $0x78] sm:$0xff] %vm598_vm1, %v597_v4  ;;  %v587_v7 = vadd.f32 %v538_v5, %v410_v1  ;;  %v595_v8 = vadd.f32 %v570_v6, %v418_v2 }
 0x126   : > { %604 = vst.msk [vmem:[%s1411_s7 + $0x28] sm:$0xff] %vm598_vm1, %v587_v7  ;;  %612 = vst.msk [vmem:[%s1411_s7 + $0x68] sm:$0xff] %vm598_vm1, %v595_v8 }
 0x127   : > { %v621_v9 = vld [vmem:[%s1401_s21 + $0x10] sm:$0xff]  ;;  %v619_v10 = vld [vmem:[%s1401_s21] sm:$0xff]  ;;  %v1292_v11 = vmov 0   ;;  %v622_v12 = vld [vmem:[%s1401_s21 + $0x18] sm:$0xff]  ;;  %vm875_vm2 = vcmask 257024  }
 0x128   : > { %1234 = vset.pattern.permute.xlu1 %v1292_v11  ;;  %1233 = vset.pattern.permute.xlu0 %v1292_v11  ;;  %v620_v13 = vld [vmem:[%s1401_s21 + $0x8] sm:$0xff]  ;;  %v623_v15 = vld [vmem:[%s1401_s21 + $0x20] sm:$0xff]  ;;  %v626_v16 = vld [vmem:[%s1401_s21 + $0x38] sm:$0xff] }
 0x129   : > { %663 = vperm.xlu1 %1234, %v621_v9   ;;  %653 = vperm.xlu0 %1233, %v619_v10   ;;  %v624_v14 = vld [vmem:[%s1401_s21 + $0x28] sm:$0xff]  ;;  %v625_v17 = vld [vmem:[%s1401_s21 + $0x30] sm:$0xff]  ;;  %v627_v19 = vld [vmem:[%s1401_s21 + $0x40] sm:$0xff] }
 0x12a   : > { %v628_v18 = vld [vmem:[%s1401_s21 + $0x48] sm:$0xff]  ;;  %v630_v20 = vld [vmem:[%s1401_s21 + $0x58] sm:$0xff]  ;;  %v629_v21 = vld [vmem:[%s1401_s21 + $0x50] sm:$0xff] }
 0x12b   : > { %v632_v22 = vld [vmem:[%s1401_s21 + $0x68] sm:$0xff]  ;;  %v631_v23 = vld [vmem:[%s1401_s21 + $0x60] sm:$0xff]  ;;  %v634_v24 = vld [vmem:[%s1401_s21 + $0x78] sm:$0xff] }
 0x12c   : > { %v633_v25 = vld [vmem:[%s1401_s21 + $0x70] sm:$0xff]  ;;  %v635_v27 = vld [vmem:[%s1411_s7] sm:$0xff]  ;;  %v638_v32 = vld [vmem:[%s1411_s7 + $0x18] sm:$0xff] }
 0x12d   : > { %668 = vperm.xlu1 %1234, %v622_v12   ;;  %658 = vperm.xlu0 %1233, %v620_v13   ;;  %v637_v26 = vld [vmem:[%s1411_s7 + $0x10] sm:$0xff]  ;;  %v747_v29 = vld [vmem:[%s1396_s13] sm:$0xff]  ;;  %v750_v33 = vld [vmem:[%s1396_s13 + $0x18] sm:$0xff] }
 0x12e   : > { %v749_v28 = vld [vmem:[%s1396_s13 + $0x10] sm:$0xff]  ;;  %v636_v34 = vld [vmem:[%s1411_s7 + $0x8] sm:$0xff]  ;;  %v751_v37 = vld [vmem:[%s1396_s13 + $0x20] sm:$0xff] }
 0x12f   : > { %v748_v35 = vld [vmem:[%s1396_s13 + $0x8] sm:$0xff]  ;;  %v754_v38 = vld [vmem:[%s1396_s13 + $0x38] sm:$0xff]  ;;  %v753_v39 = vld [vmem:[%s1396_s13 + $0x30] sm:$0xff] }
 0x130   : > { %v752_v36 = vld [vmem:[%s1396_s13 + $0x28] sm:$0xff]  ;;  %v1541_v41 = vld [vmem:[%s1396_s13 + $0x40] sm:$0xff]  ;;  %v1544_v44 = vld [vmem:[%s1396_s13 + $0x58] sm:$0xff] }
 0x131   : > { %678 = vperm.xlu1 %1234, %v624_v14   ;;  %673 = vperm.xlu0 %1233, %v623_v15   ;;  %v1538_v40 = vld [vmem:[%s1396_s13 + $0x48] sm:$0xff]  ;;  %v1547_v45 = vld [vmem:[%s1396_s13 + $0x50] sm:$0xff]  ;;  %v1553_v47 = vld [vmem:[%s1396_s13 + $0x60] sm:$0xff] }
 0x132   : > { %v1550_v46 = vld [vmem:[%s1396_s13 + $0x68] sm:$0xff]  ;;  %v1556_v48 = vld [vmem:[%s1396_s13 + $0x78] sm:$0xff]  ;;  %v1559_v49 = vld [vmem:[%s1396_s13 + $0x70] sm:$0xff] }
 0x133   : > { %v640_v60 = vld [vmem:[%s1411_s7 + $0x28] sm:$0xff]  ;;  %v639_v61 = vld [vmem:[%s1411_s7 + $0x20] sm:$0xff]  ;;  %v642_v8 = vld [vmem:[%s1411_s7 + $0x38] sm:$0xff] }
 0x134   : > { %v641_v9 = vld [vmem:[%s1411_s7 + $0x30] sm:$0xff] }
 0x135   : > { %688 = vperm.xlu1 %1234, %v626_v16   ;;  %683 = vperm.xlu0 %1233, %v625_v17  }
 0x139   : > { %698 = vperm.xlu1 %1234, %v628_v18   ;;  %693 = vperm.xlu0 %1233, %v627_v19  }
 0x13d   : > { %708 = vperm.xlu1 %1234, %v630_v20   ;;  %703 = vperm.xlu0 %1233, %v629_v21   ;;  %v644_v20 = vld [vmem:[%s1411_s7 + $0x48] sm:$0xff]  ;;  %v643_v21 = vld [vmem:[%s1411_s7 + $0x40] sm:$0xff] }
 0x141   : > { %718 = vperm.xlu1 %1234, %v632_v22   ;;  %713 = vperm.xlu0 %1233, %v631_v23  }
 0x145   : > { %728 = vperm.xlu1 %1234, %v634_v24   ;;  %723 = vperm.xlu0 %1233, %v633_v25  }
 0x1a4   : > { %v664_v30 = vpop.permute.xlu1 %663  ;;  %v654_v31 = vpop.permute.xlu0 %653 }
 0x1a5   : > { %v733_v42 = vmul.f32 %v664_v30, %v637_v26  ;;  %v731_v43 = vmul.f32 %v654_v31, %v635_v27 }
 0x1a7   : > { %v765_v50 = vadd.f32 %v749_v28, %v733_v42  ;;  %v797_v51 = vmul.f32 %v733_v42, %v664_v30  ;;  %v763_v52 = vadd.f32 %v747_v29, %v731_v43  ;;  %v795_v53 = vmul.f32 %v731_v43, %v654_v31 }
 0x1a8   : > { %v669_v54 = vpop.permute.xlu1 %668  ;;  %v659_v55 = vpop.permute.xlu0 %658 }
 0x1a9   : > { %v1089_v56 = vpack.c.bf16 %v797_v51, %v797_v51  ;;  %v1087_v57 = vpack.c.bf16 %v795_v53, %v795_v53  ;;  %v734_v58 = vmul.f32 %v669_v54, %v638_v32  ;;  %v732_v59 = vmul.f32 %v659_v55, %v636_v34  ;;  %779 = vst.msk [vmem:[%s1411_s7] sm:$0xff] %vm598_vm1, %v763_v52  ;;  %v646_v32 = vld [vmem:[%s1411_s7 + $0x58] sm:$0xff]  ;;  %v648_v52 = vld [vmem:[%s1411_s7 + $0x68] sm:$0xff]  ;;  %v647_v53 = vld [vmem:[%s1411_s7 + $0x60] sm:$0xff] }
 0x1aa   : > { %781 = vst.msk [vmem:[%s1411_s7 + $0x10] sm:$0xff] %vm598_vm1, %v765_v50 }
 0x1ab   : > { %878 = vst.msk [vmem:[%s1406_s17 + $0x8] sm:$0xf] %vm875_vm2, %v1089_v56  ;;  %876 = vst.msk [vmem:[%s1406_s17] sm:$0xf] %vm875_vm2, %v1087_v57  ;;  %v766_v62 = vadd.f32 %v750_v33, %v734_v58  ;;  %v798_v63 = vmul.f32 %v734_v58, %v669_v54  ;;  %v764_v0 = vadd.f32 %v748_v35, %v732_v59  ;;  %v645_v33 = vld [vmem:[%s1411_s7 + $0x50] sm:$0xff] }
 0x1ac   : > { %v796_v1 = vmul.f32 %v732_v59, %v659_v55  ;;  %v679_v2 = vpop.permute.xlu1 %678  ;;  %v674_v3 = vpop.permute.xlu0 %673 }
 0x1ad   : > { %v1090_v4 = vpack.c.bf16 %v798_v63, %v798_v63  ;;  %v736_v6 = vmul.f32 %v679_v2, %v640_v60  ;;  %v735_v7 = vmul.f32 %v674_v3, %v639_v61  ;;  %780 = vst.msk [vmem:[%s1411_s7 + $0x8] sm:$0xff] %vm598_vm1, %v764_v0  ;;  %782 = vst.msk [vmem:[%s1411_s7 + $0x18] sm:$0xff] %vm598_vm1, %v766_v62  ;;  %v650_v62 = vld [vmem:[%s1411_s7 + $0x78] sm:$0xff]  ;;  %v649_v63 = vld [vmem:[%s1411_s7 + $0x70] sm:$0xff] }
 0x1ae   : > { %v1088_v5 = vpack.c.bf16 %v796_v1, %v796_v1 }
 0x1af   : > { %879 = vst.msk [vmem:[%s1406_s17 + $0xc] sm:$0xf] %vm875_vm2, %v1090_v4  ;;  %v768_v10 = vadd.f32 %v752_v36, %v736_v6  ;;  %v800_v11 = vmul.f32 %v736_v6, %v679_v2  ;;  %v767_v12 = vadd.f32 %v751_v37, %v735_v7  ;;  %v799_v13 = vmul.f32 %v735_v7, %v674_v3 }
 0x1b0   : > { %877 = vst.msk [vmem:[%s1406_s17 + $0x4] sm:$0xf] %vm875_vm2, %v1088_v5  ;;  %v689_v14 = vpop.permute.xlu1 %688  ;;  %v684_v15 = vpop.permute.xlu0 %683 }
 0x1b1   : > { %v1092_v16 = vpack.c.bf16 %v800_v11, %v800_v11  ;;  %v1091_v17 = vpack.c.bf16 %v799_v13, %v799_v13  ;;  %v738_v18 = vmul.f32 %v689_v14, %v642_v8  ;;  %v737_v19 = vmul.f32 %v684_v15, %v641_v9  ;;  %783 = vst.msk [vmem:[%s1411_s7 + $0x20] sm:$0xff] %vm598_vm1, %v767_v12 }
 0x1b2   : > { %784 = vst.msk [vmem:[%s1411_s7 + $0x28] sm:$0xff] %vm598_vm1, %v768_v10 }
 0x1b3   : > { %881 = vst.msk [vmem:[%s1406_s17 + $0x14] sm:$0xf] %vm875_vm2, %v1092_v16  ;;  %880 = vst.msk [vmem:[%s1406_s17 + $0x10] sm:$0xf] %vm875_vm2, %v1091_v17  ;;  %v770_v22 = vadd.f32 %v754_v38, %v738_v18  ;;  %v802_v23 = vmul.f32 %v738_v18, %v689_v14  ;;  %v769_v24 = vadd.f32 %v753_v39, %v737_v19 }
 0x1b4   : > { %v801_v25 = vmul.f32 %v737_v19, %v684_v15  ;;  %v699_v26 = vpop.permute.xlu1 %698  ;;  %v694_v27 = vpop.permute.xlu0 %693 }
 0x1b5   : > { %v1094_v28 = vpack.c.bf16 %v802_v23, %v802_v23  ;;  %v740_v30 = vmul.f32 %v699_v26, %v644_v20  ;;  %v739_v31 = vmul.f32 %v694_v27, %v643_v21  ;;  %785 = vst.msk [vmem:[%s1411_s7 + $0x30] sm:$0xff] %vm598_vm1, %v769_v24  ;;  %786 = vst.msk [vmem:[%s1411_s7 + $0x38] sm:$0xff] %vm598_vm1, %v770_v22 }
 0x1b6   : > { %v1093_v29 = vpack.c.bf16 %v801_v25, %v801_v25 }
 0x1b7   : > { %883 = vst.msk [vmem:[%s1406_s17 + $0x1c] sm:$0xf] %vm875_vm2, %v1094_v28  ;;  %v772_v34 = vadd.f32 %v1538_v40, %v740_v30  ;;  %v804_v35 = vmul.f32 %v740_v30, %v699_v26  ;;  %v771_v36 = vadd.f32 %v1541_v41, %v739_v31  ;;  %v803_v37 = vmul.f32 %v739_v31, %v694_v27 }
 0x1b8   : > { %882 = vst.msk [vmem:[%s1406_s17 + $0x18] sm:$0xf] %vm875_vm2, %v1093_v29  ;;  %v709_v38 = vpop.permute.xlu1 %708  ;;  %v704_v39 = vpop.permute.xlu0 %703 }
 0x1b9   : > { %v1096_v42 = vpack.c.bf16 %v804_v35, %v804_v35  ;;  %v1095_v43 = vpack.c.bf16 %v803_v37, %v803_v37  ;;  %v742_v50 = vmul.f32 %v709_v38, %v646_v32  ;;  %v741_v51 = vmul.f32 %v704_v39, %v645_v33  ;;  %787 = vst.msk [vmem:[%s1411_s7 + $0x40] sm:$0xff] %vm598_vm1, %v771_v36 }
 0x1ba   : > { %788 = vst.msk [vmem:[%s1411_s7 + $0x48] sm:$0xff] %vm598_vm1, %v772_v34 }
 0x1bb   : > { %885 = vst.msk [vmem:[%s1406_s17 + $0x24] sm:$0xf] %vm875_vm2, %v1096_v42  ;;  %884 = vst.msk [vmem:[%s1406_s17 + $0x20] sm:$0xf] %vm875_vm2, %v1095_v43  ;;  %v774_v40 = vadd.f32 %v1544_v44, %v742_v50  ;;  %v806_v41 = vmul.f32 %v742_v50, %v709_v38  ;;  %v773_v54 = vadd.f32 %v1547_v45, %v741_v51 }
 0x1bc   : > { %v805_v55 = vmul.f32 %v741_v51, %v704_v39  ;;  %v719_v56 = vpop.permute.xlu1 %718  ;;  %v714_v57 = vpop.permute.xlu0 %713 }
 0x1bd   : > { %v1098_v58 = vpack.c.bf16 %v806_v41, %v806_v41  ;;  %v744_v60 = vmul.f32 %v719_v56, %v648_v52  ;;  %v743_v61 = vmul.f32 %v714_v57, %v647_v53  ;;  %789 = vst.msk [vmem:[%s1411_s7 + $0x50] sm:$0xff] %vm598_vm1, %v773_v54  ;;  %790 = vst.msk [vmem:[%s1411_s7 + $0x58] sm:$0xff] %vm598_vm1, %v774_v40 }
 0x1be   : > { %v1097_v59 = vpack.c.bf16 %v805_v55, %v805_v55 }
 0x1bf   : > { %887 = vst.msk [vmem:[%s1406_s17 + $0x2c] sm:$0xf] %vm875_vm2, %v1098_v58  ;;  %v776_v44 = vadd.f32 %v1550_v46, %v744_v60  ;;  %v808_v45 = vmul.f32 %v744_v60, %v719_v56  ;;  %v775_v0 = vadd.f32 %v1553_v47, %v743_v61  ;;  %v807_v1 = vmul.f32 %v743_v61, %v714_v57 }
 0x1c0   : > { %886 = vst.msk [vmem:[%s1406_s17 + $0x28] sm:$0xf] %vm875_vm2, %v1097_v59  ;;  %v729_v2 = vpop.permute.xlu1 %728  ;;  %v724_v3 = vpop.permute.xlu0 %723 }
 0x1c1   : > { %v1100_v4 = vpack.c.bf16 %v808_v45, %v808_v45  ;;  %v1099_v5 = vpack.c.bf16 %v807_v1, %v807_v1  ;;  %v746_v6 = vmul.f32 %v729_v2, %v650_v62  ;;  %791 = vst.msk [vmem:[%s1411_s7 + $0x60] sm:$0xff] %vm598_vm1, %v775_v0  ;;  %792 = vst.msk [vmem:[%s1411_s7 + $0x68] sm:$0xff] %vm598_vm1, %v776_v44 }
 0x1c2   : > { %v745_v7 = vmul.f32 %v724_v3, %v649_v63 }
 0x1c3   : > { %889 = vst.msk [vmem:[%s1406_s17 + $0x34] sm:$0xf] %vm875_vm2, %v1100_v4  ;;  %888 = vst.msk [vmem:[%s1406_s17 + $0x30] sm:$0xf] %vm875_vm2, %v1099_v5  ;;  %v778_v46 = vadd.f32 %v1556_v48, %v746_v6  ;;  %v810_v47 = vmul.f32 %v746_v6, %v729_v2 }
 0x1c4   : > { %v777_v8 = vadd.f32 %v1559_v49, %v745_v7  ;;  %v809_v9 = vmul.f32 %v745_v7, %v724_v3 }
 0x1c5   : > { %v1102_v10 = vpack.c.bf16 %v810_v47, %v810_v47  ;;  %794 = vst.msk [vmem:[%s1411_s7 + $0x78] sm:$0xff] %vm598_vm1, %v778_v46 }
 0x1c6   : > { %793 = vst.msk [vmem:[%s1411_s7 + $0x70] sm:$0xff] %vm598_vm1, %v777_v8  ;;  %v1101_v11 = vpack.c.bf16 %v809_v9, %v809_v9 }
 0x1c7   : > { %891 = vst.msk [vmem:[%s1406_s17 + $0x3c] sm:$0xf] %vm875_vm2, %v1102_v10 }
 0x1c8   : > { %890 = vst.msk [vmem:[%s1406_s17 + $0x38] sm:$0xf] %vm875_vm2, %v1101_v11 }
 0x1c9 PF: > { %s16_s24 = sadd.s32 1, %s1289_s24   ;;  %s1672_s18 = smov %s1269_s19 }
 0x1ca   : > { %p13_p0 = scmp.ge.s32.totalorder %s16_s24, 6   ;;  %s1673_s19 = smov %s1374_s6 }
 0x1cb   : > { %s1674_s20 = smov %s1281_s22  ;;  %s1675_s21 = smov %s1285_s23 }
 0x1cc   : > { %s1676_s22 = smov %s1679_s25  ;;  %s1677_s23 = smov %s1683_s26 }
 0x1cd   :  { %15 = sbr.rel (!%p13_p0) target bundleno = 4 (0x4), region = 138 }

// kernel: _computer_impl.11
= control target key start
LH: loop header
LB: loop body
LE: loop exit
PB: predicated region body
PF: predicated region fallthrough
CT: control target
= control target key end

     0   :  { %s1862_s0 = inlined_call_operand.vmem [shape: s8[256,256], index: 0, kind: input, shape index: {}]   ;;  %s1863_s1 = inlined_call_operand.vmem [shape: bf16[256,32], index: 1, kind: input, shape index: {}]   ;;  %s1864_s2 = inlined_call_operand.vmem [shape: f32[256,32], index: 2, kind: input, shape index: {}, may-alias: {2,5}]   ;;  %s1865_s3 = inlined_call_operand.vmem [shape: f32[256,1], index: 3, kind: input, shape index: {}]   ;;  %s1866_s4 = inlined_call_operand.hbm [shape: bf16[256,32], index: 4, kind: output, shape index: {0}]   ;;  %s1867_s5 = inlined_call_operand.vmem [shape: f32[256,32], index: 5, kind: output, shape index: {1}, may-alias: {2,5}]  }
   0x1   :  { %1874 = sst [smem:[#allocation13_spill]] %s1862_s0 }
   0x2   :  { %11 = vsyncpa [#allocation4], 0 }
   0x3   :  { %13 = vsyncpa [#allocation4 + $0x1], 0  ;;  %s1433_s18 = smov 0   ;;  %s1435_s19 = smov 0  }
   0x4   :  { %s1437_s20 = smov 0   ;;  %s1439_s21 = smov 0  }
   0x5   :  { %s1441_s22 = smov 0   ;;  %s1443_s23 = smov 0  }
   0x6   :  { %s1445_s24 = smov 0   ;;  %s1447_s25 = smov 0  }
   0x7   :  { %s1449_s26 = smov 0   ;;  %s1451_s27 = smov 0  }
   0x8 LB: > { %1875 = sst [smem:[#allocation6_spill]] %s1376_s22  ;;  %s1055_s28 = sadd.s32 4294967295, %s1396_s27   ;;  %s1396_s27 = sphi %s1451_s27, %s19_s27   ;;  %s1392_s26 = sphi %s1449_s26, %s1893_s26   ;;  %s1388_s25 = sphi %s1447_s25, %s1892_s25   ;;  %s1384_s24 = sphi %s1445_s24, %s1891_s24   ;;  %s1380_s23 = sphi %s1443_s23, %s1890_s23   ;;  %s1376_s22 = sphi %s1441_s22, %s1897_s22   ;;  %s1372_s21 = sphi %s1439_s21, %s1888_s21   ;;  %s1368_s20 = sphi %s1437_s20, %s1896_s20   ;;  %s1364_s19 = sphi %s1435_s19, %s1895_s19   ;;  %s1360_s18 = sphi %s1433_s18, %s1894_s18  }
   0x9   : > { %1876 = sst [smem:[#allocation7_spill]] %s1388_s25  ;;  %s1056_s29 = sadd.s32 4294967294, %s1396_s27  }
   0xa   : > { %1877 = sst [smem:[#allocation8_spill]] %s1392_s26  ;;  %s28_s30 = sadd.s32 1, %s1388_s25 }
   0xb   : > { %s31_s6 = sadd.s32 1, %s1392_s26  ;;  %p29_p0 = scmp.ge.s32.totalorder %s28_s30, 2 }
   0xc   : > { %s40_s7 = sadd.s32 1, %s1376_s22  ;;  %p47_p1 = scmp.ne.s32.totalorder %s1376_s22, %s1372_s21 }
   0xd   : > { %p48_p2 = scmp.eq.s32.totalorder %s1396_s27, 0  ;;  %s1899_s30 = smov (%p29_p0, %s28_s30), 0 }
   0xe   : > { %1878 = sst [smem:[#allocation9_spill]] %s1899_s30  ;;  %s1901_s6 = smov (!%p29_p0, %s31_s6), %s1392_s26 }
   0xf   : > { %s36_s8 = ssub.s32 %s1388_s25, %s1899_s30  ;;  %p1496_p3 = por %p48_p2, %p47_p1 }
  0x10   : > { %p33_p4 = scmp.ge.s32.totalorder %s1901_s6, 2  ;;  %s144_s10 = sadd.s32 1, %s1368_s20 }
  0x11   : > { %p154_p5 = scmp.ne.s32.totalorder %s1368_s20, %s1364_s19  ;;  %p155_p6 = scmp.eq.s32.totalorder %s1055_s28, 3 }
  0x12   : > { %s1903_s6 = smov (%p33_p4, %s1901_s6), 0  ;;  %p160_p8 = scmp.ne.s32.totalorder %s1364_s19, %s1360_s18 }
  0x13   : > { %1880 = sst [smem:[#allocation10_spill]] %s1903_s6  ;;  %p1505_p7 = por %p155_p6, %p154_p5 }
  0x14   : > { %s35_s12 = ssub.s32 %s1392_s26, %s1903_s6  ;;  %p161_p9 = scmp.eq.s32.totalorder %s1056_s29, 3 }
  0x15   : > { %s37_s13 = sor.u32 %s36_s8, %s35_s12  ;;  %p142_p10 = scmp.eq.s32.totalorder %s35_s12, 0 }
  0x16   : > { %p38_p11 = scmp.eq.s32.totalorder %s37_s13, 0  ;;  %p1513_p12 = por %p161_p9, %p160_p8 }
  0x17   : > { %s1518_s15 = scalar_select %p142_p10, %s1368_s20, %s144_s10  }
  0x18   : > { %s1521_s16 = scalar_select %p38_p11, %s1376_s22, %s40_s7  }
  0x19   : > { %1883 = sst [smem:[#allocation11_spill]] %s1518_s15  ;;  %p1058_p13 = scmp.ge.s32.totalorder %s1396_s27, 4 }
  0x1a   : > { %1884 = sst [smem:[#allocation12_spill]] %s1521_s16 }
  0x1b   : > { %203 = sbr.rel (%p1058_p13) target bundleno = 44 (0x2c), region = 16 }
  0x20   : > { %206 = sbr.rel (!%p1496_p3) target bundleno = 44 (0x2c), region = 20  ;;  %s208_s17 = sand.u32 (%p1496_p3), 1, %s1376_s22  }
  0x21   : > { %s1105_s28 = sshll.u32 (%p1496_p3), %s1392_s26, 3  ;;  %s1059_s29 = sshll.u32 (%p1496_p3), %s208_s17, 5 }
  0x22   : > { %s213_s8 = sadd.s32 (%p1496_p3), %s1388_s25, %s1105_s28  ;;  %s1885_s0 = sld [smem:[#allocation13_spill]] (%p1496_p3) }
  0x23   : > { %s1062_s12 = sshll.u32 (%p1496_p3), %s213_s8, 3  ;;  %s210_s7 = scalar_lea.vmem (%p1496_p3), [#allocation2], %s1059_s29 }
  0x28   : > { %s215_s10 = scalar_lea.vmem %s1885_s0, %s1062_s12 }
  0x29   : > { %v250_v0 = vld [vmem:[%s215_s10] sm:$0xff]  ;;  %v252_v1 = vld [vmem:[%s215_s10 + $0x10] sm:$0xff] }
  0x2a   : > { %v254_v2 = vld [vmem:[%s215_s10 + $0x20] sm:$0xff]  ;;  %251 = vst [vmem:[%s210_s7] sm:$0xff] %v250_v0  ;;  %253 = vst [vmem:[%s210_s7 + $0x8] sm:$0xff] %v252_v1  ;;  %v256_v3 = vld [vmem:[%s215_s10 + $0x30] sm:$0xff] }
  0x2b   : > { %255 = vst [vmem:[%s210_s7 + $0x10] sm:$0xff] %v254_v2  ;;  %257 = vst [vmem:[%s210_s7 + $0x18] sm:$0xff] %v256_v3 }
  0x2c PF: > { %p1063_p0 = scmp.ge.s32.totalorder %s1396_s27, 1  ;;  %p289_p1 = scmp.lt.s32.totalorder %s1396_s27, 5 }
  0x2e   : > { %p290_p2 = pnand %p1063_p0, %p289_p1 }
  0x2f   : > { %s296_s6 = sand.u32 (!%p290_p2), 1, %s1372_s21   ;;  %s1871_s9 = sand.u32 (!%p290_p2), 1, %s1364_s19  }
  0x30   : > { %293 = sbr.rel (%p290_p2) target bundleno = 501 (0x1f5), region = 70  ;;  %s1064_s17 = sshll.u32 (!%p290_p2), %s296_s6, 5 }
  0x31   : > { %s1065_s28 = sshll.u32 (!%p290_p2), %s1871_s9, 6  ;;  %s1066_s29 = sshll.u32 (!%p290_p2), %s1380_s23, 4 }
  0x32   : > { %s1068_s8 = sshll.u32 (!%p290_p2), %s1384_s24, 4  ;;  %p345_p3 = scmp.lt.s32.totalorder (!%p290_p2), %s1066_s29, 31 }
  0x33   : > { %p351_p4 = scmp.lt.s32.totalorder (!%p290_p2), %s1068_s8, 31  ;;  %s1560_s15 = scalar_lea.vmem (!%p290_p2), [#allocation2], %s1064_s17 }
  0x34   : > { %p1074_p5 = scmp.ne.s32.totalorder (!%p290_p2), %s1380_s23, 0 }
  0x35   : > { %s1905_s29 = smov (!%p345_p3, %s1066_s29), 31  ;;  %s1907_s8 = smov (!%p351_p4, %s1068_s8), 31 }
  0x36   : > { %s1067_s12 = sshll.u32 %s1905_s29, 2  ;;  %s1069_s0 = sshll.u32 %s1907_s8, 3 }
  0x37   : > { %s1543_s7 = scalar_lea.vmem %s1863_s1, %s1067_s12  ;;  %s1548_s21 = scalar_lea.vmem %s1864_s2, %s1069_s0 }
  0x38   : > { %s1553_s25 = scalar_lea.vmem %s1865_s3, %s1069_s0  ;;  %s1558_s29 = scalar_lea.vmem %s1867_s5, %s1069_s0 }
  0x39   : > { %s1562_s12 = scalar_lea.vmem [#allocation3], %s1065_s28  ;;  %373 = sbr.rel (%p1074_p5) target bundleno = 71 (0x47), region = 78 }
  0x3e   : > { %vm374_vm0 = vcmask 261120   ;;  %v1398_v4 = vmov 0.0  }
  0x3f   : > { %375 = vst.msk [vmem:[%s1558_s29] sm:$0xff] %vm374_vm0, %v1398_v4  ;;  %376 = vst.msk [vmem:[%s1558_s29 + $0x8] sm:$0xff] %vm374_vm0, %v1398_v4 }
  0x40   : > { %377 = vst.msk [vmem:[%s1558_s29 + $0x10] sm:$0xff] %vm374_vm0, %v1398_v4  ;;  %378 = vst.msk [vmem:[%s1558_s29 + $0x18] sm:$0xff] %vm374_vm0, %v1398_v4 }
  0x41   : > { %379 = vst.msk [vmem:[%s1558_s29 + $0x20] sm:$0xff] %vm374_vm0, %v1398_v4  ;;  %380 = vst.msk [vmem:[%s1558_s29 + $0x28] sm:$0xff] %vm374_vm0, %v1398_v4 }
  0x42   : > { %381 = vst.msk [vmem:[%s1558_s29 + $0x30] sm:$0xff] %vm374_vm0, %v1398_v4  ;;  %382 = vst.msk [vmem:[%s1558_s29 + $0x38] sm:$0xff] %vm374_vm0, %v1398_v4 }
  0x43   : > { %383 = vst.msk [vmem:[%s1558_s29 + $0x40] sm:$0xff] %vm374_vm0, %v1398_v4  ;;  %384 = vst.msk [vmem:[%s1558_s29 + $0x48] sm:$0xff] %vm374_vm0, %v1398_v4 }
  0x44   : > { %385 = vst.msk [vmem:[%s1558_s29 + $0x50] sm:$0xff] %vm374_vm0, %v1398_v4  ;;  %386 = vst.msk [vmem:[%s1558_s29 + $0x58] sm:$0xff] %vm374_vm0, %v1398_v4 }
  0x45   : > { %387 = vst.msk [vmem:[%s1558_s29 + $0x60] sm:$0xff] %vm374_vm0, %v1398_v4  ;;  %388 = vst.msk [vmem:[%s1558_s29 + $0x68] sm:$0xff] %vm374_vm0, %v1398_v4 }
  0x46   : > { %389 = vst.msk [vmem:[%s1558_s29 + $0x70] sm:$0xff] %vm374_vm0, %v1398_v4  ;;  %390 = vst.msk [vmem:[%s1558_s29 + $0x78] sm:$0xff] %vm374_vm0, %v1398_v4 }
  0x47 PF: > { %v1278_v5 = vld [vmem:[%s1543_s7 + $0x38] sm:$0xff]   ;;  %v1279_v6 = vld [vmem:[%s1543_s7 + $0x30] sm:$0xff]   ;;  %v1280_v7 = vld [vmem:[%s1543_s7 + $0x28] sm:$0xff]   ;;  %vm596_vm1 = vcmask 261120   ;;  %p1083_p6 = scmp.ne.s32.totalorder %s1380_s23, 1 }
  0x48   : > { %1139 = vmatprep.subr.bf16.mxu0 %v1278_v5  ;;  %1171 = vmatprep.subr.bf16.mxu1 %v1278_v5  ;;  %v1281_v8 = vld [vmem:[%s1543_s7 + $0x20] sm:$0xff]   ;;  %v393_v10 = vld [vmem:[%s1560_s15 + $0x10] sm:$0xff]  ;;  %v1282_v13 = vld [vmem:[%s1543_s7 + $0x18] sm:$0xff]  }
  0x49   : > { %1140 = vmatpush3.bf16.msra.mxu0 %v1278_v5  ;;  %1179 = vmatpush3.bf16.msra.mxu1 %v1278_v5  ;;  %v391_v9 = vld [vmem:[%s1560_s15] sm:$0xff]  ;;  %v399_v12 = vunpack.c.l.s8.bf16 %v393_v10  ;;  %v1283_v14 = vld [vmem:[%s1543_s7 + $0x10] sm:$0xff]   ;;  %v1284_v15 = vld [vmem:[%s1543_s7 + $0x8] sm:$0xff]   ;;  %v400_v20 = vunpack.c.h.s8.bf16 %v393_v10 }
  0x4a   : > { %1141 = vmatprep.subr.bf16.mxu0 %v1279_v6  ;;  %1172 = vmatprep.subr.bf16.mxu1 %v1279_v6  ;;  %v395_v11 = vunpack.c.l.s8.bf16 %v391_v9  ;;  %v1285_v16 = vld [vmem:[%s1543_s7] sm:$0xff]   ;;  %v392_v17 = vld [vmem:[%s1560_s15 + $0x8] sm:$0xff]  ;;  %v394_v18 = vld [vmem:[%s1560_s15 + $0x18] sm:$0xff]  ;;  %v396_v19 = vunpack.c.h.s8.bf16 %v391_v9 }
  0x4b   : > { %1163 = vmatprep.mubr.bf16.mxu1 %v399_v12  ;;  %v397_v21 = vunpack.c.l.s8.bf16 %v392_v17  ;;  %v401_v22 = vunpack.c.l.s8.bf16 %v394_v18  ;;  %v398_v23 = vunpack.c.h.s8.bf16 %v392_v17  ;;  %v402_v24 = vunpack.c.h.s8.bf16 %v394_v18  ;;  %v405_v25 = vld [vmem:[%s1558_s29 + $0x10] sm:$0xff]  ;;  %v403_v29 = vld [vmem:[%s1558_s29] sm:$0xff]  ;;  %v406_v35 = vld [vmem:[%s1558_s29 + $0x18] sm:$0xff] }
  0x4c   : > { %1155 = vmatprep.mubr.bf16.mxu0 %v395_v11  ;;  %v413_v26 = vld [vmem:[%s1558_s29 + $0x50] sm:$0xff]  ;;  %v411_v30 = vld [vmem:[%s1558_s29 + $0x40] sm:$0xff]  ;;  %v414_v36 = vld [vmem:[%s1558_s29 + $0x58] sm:$0xff] }
  0x4d   : > { %1142 = vmatpush3.bf16.msra.mxu0 %v1279_v6  ;;  %1180 = vmatpush3.bf16.msra.mxu1 %v1279_v6  ;;  %v404_v41 = vld [vmem:[%s1558_s29 + $0x8] sm:$0xff]  ;;  %v409_v47 = vld [vmem:[%s1558_s29 + $0x30] sm:$0xff]  ;;  %v407_v53 = vld [vmem:[%s1558_s29 + $0x20] sm:$0xff] }
  0x4e   : > { %1143 = vmatprep.subr.bf16.mxu0 %v1280_v7  ;;  %1173 = vmatprep.subr.bf16.mxu1 %v1280_v7  ;;  %v412_v42 = vld [vmem:[%s1558_s29 + $0x48] sm:$0xff]  ;;  %v417_v48 = vld [vmem:[%s1558_s29 + $0x70] sm:$0xff]  ;;  %v415_v54 = vld [vmem:[%s1558_s29 + $0x60] sm:$0xff] }
  0x4f   : > { %v410_v59 = vld [vmem:[%s1558_s29 + $0x38] sm:$0xff]  ;;  %v408_v1 = vld [vmem:[%s1558_s29 + $0x28] sm:$0xff] }
  0x50   : > { %v418_v60 = vld [vmem:[%s1558_s29 + $0x78] sm:$0xff]  ;;  %v416_v2 = vld [vmem:[%s1558_s29 + $0x68] sm:$0xff] }
  0x51   : > { %1144 = vmatpush3.bf16.msra.mxu0 %v1280_v7  ;;  %1181 = vmatpush3.bf16.msra.mxu1 %v1280_v7 }
  0x52   : > { %1145 = vmatprep.subr.bf16.mxu0 %v1281_v8  ;;  %1174 = vmatprep.subr.bf16.mxu1 %v1281_v8 }
  0x55   : > { %1146 = vmatpush3.bf16.msra.mxu0 %v1281_v8  ;;  %1182 = vmatpush3.bf16.msra.mxu1 %v1281_v8 }
  0x56   : > { %1147 = vmatprep.subr.bf16.mxu0 %v1282_v13  ;;  %1175 = vmatprep.subr.bf16.mxu1 %v1282_v13 }
  0x59   : > { %1148 = vmatpush3.bf16.msra.mxu0 %v1282_v13  ;;  %1183 = vmatpush3.bf16.msra.mxu1 %v1282_v13 }
  0x5a   : > { %1149 = vmatprep.subr.bf16.mxu0 %v1283_v14  ;;  %1176 = vmatprep.subr.bf16.mxu1 %v1283_v14 }
  0x5d   : > { %1150 = vmatpush3.bf16.msra.mxu0 %v1283_v14  ;;  %1184 = vmatpush3.bf16.msra.mxu1 %v1283_v14 }
  0x5e   : > { %1151 = vmatprep.subr.bf16.mxu0 %v1284_v15  ;;  %1177 = vmatprep.subr.bf16.mxu1 %v1284_v15 }
  0x61   : > { %1152 = vmatpush3.bf16.msra.mxu0 %v1284_v15  ;;  %1185 = vmatpush3.bf16.msra.mxu1 %v1284_v15 }
  0x62   : > { %1153 = vmatprep.subr.bf16.mxu0 %v1285_v16  ;;  %1178 = vmatprep.subr.bf16.mxu1 %v1285_v16 }
  0x65   : > { %1154 = vmatpush3.bf16.msra.mxu0 %v1285_v16  ;;  %1186 = vmatpush3.bf16.msra.mxu1 %v1285_v16 }
  0x68   : > { %1156 = vmatmul.mubr.bf16.vlgmr.msra.gmra.mxu0 %v396_v19  ;;  %1164 = vmatmul.mubr.bf16.vlgmr.msra.gmra.mxu1 %v400_v20 }
  0x69   : > { %1159 = vmatprep.mubr.bf16.mxu0 %v397_v21  ;;  %1167 = vmatprep.mubr.bf16.mxu1 %v401_v22 }
  0x70   : > { %1160 = vmatmul.mubr.bf16.gmra.mxu0 %v398_v23  ;;  %1168 = vmatmul.mubr.bf16.gmra.mxu1 %v402_v24 }
 0x128   : > { %v1157_v27 = vpop.f32.mrf.mxu0  ;;  %v1165_v28 = vpop.f32.mrf.mxu1 }
 0x129   : > { %v582_v31 = vadd.f32 %v1157_v27, %v405_v25  ;;  %v590_v32 = vadd.f32 %v1165_v28, %v413_v26 }
 0x12a   : > { %v517_v33 = vpop.f32.mrf.mxu0  ;;  %v549_v34 = vpop.f32.mrf.mxu1 }
 0x12b   : > { %599 = vst.msk [vmem:[%s1558_s29 + $0x10] sm:$0xff] %vm596_vm1, %v582_v31  ;;  %607 = vst.msk [vmem:[%s1558_s29 + $0x50] sm:$0xff] %vm596_vm1, %v590_v32  ;;  %v580_v37 = vadd.f32 %v517_v33, %v403_v29  ;;  %v588_v38 = vadd.f32 %v549_v34, %v411_v30 }
 0x12c   : > { %v1158_v39 = vpop.f32.mrf.mxu0  ;;  %v1166_v40 = vpop.f32.mrf.mxu1 }
 0x12d   : > { %597 = vst.msk [vmem:[%s1558_s29] sm:$0xff] %vm596_vm1, %v580_v37  ;;  %605 = vst.msk [vmem:[%s1558_s29 + $0x40] sm:$0xff] %vm596_vm1, %v588_v38  ;;  %v583_v43 = vadd.f32 %v1158_v39, %v406_v35  ;;  %v591_v44 = vadd.f32 %v1166_v40, %v414_v36 }
 0x12e   : > { %v520_v45 = vpop.f32.mrf.mxu0  ;;  %v552_v46 = vpop.f32.mrf.mxu1 }
 0x12f   : > { %600 = vst.msk [vmem:[%s1558_s29 + $0x18] sm:$0xff] %vm596_vm1, %v583_v43  ;;  %608 = vst.msk [vmem:[%s1558_s29 + $0x58] sm:$0xff] %vm596_vm1, %v591_v44  ;;  %v581_v49 = vadd.f32 %v520_v45, %v404_v41  ;;  %v589_v50 = vadd.f32 %v552_v46, %v412_v42 }
 0x130   : > { %v1161_v51 = vpop.f32.mrf.mxu0  ;;  %v1169_v52 = vpop.f32.mrf.mxu1 }
 0x131   : > { %598 = vst.msk [vmem:[%s1558_s29 + $0x8] sm:$0xff] %vm596_vm1, %v581_v49  ;;  %606 = vst.msk [vmem:[%s1558_s29 + $0x48] sm:$0xff] %vm596_vm1, %v589_v50  ;;  %v586_v55 = vadd.f32 %v1161_v51, %v409_v47  ;;  %v594_v56 = vadd.f32 %v1169_v52, %v417_v48 }
 0x132   : > { %v533_v57 = vpop.f32.mrf.mxu0  ;;  %v565_v58 = vpop.f32.mrf.mxu1 }
 0x133   : > { %603 = vst.msk [vmem:[%s1558_s29 + $0x30] sm:$0xff] %vm596_vm1, %v586_v55  ;;  %611 = vst.msk [vmem:[%s1558_s29 + $0x70] sm:$0xff] %vm596_vm1, %v594_v56  ;;  %v584_v61 = vadd.f32 %v533_v57, %v407_v53  ;;  %v592_v62 = vadd.f32 %v565_v58, %v415_v54 }
 0x134   : > { %v1162_v63 = vpop.f32.mrf.mxu0  ;;  %v1170_v0 = vpop.f32.mrf.mxu1 }
 0x135   : > { %601 = vst.msk [vmem:[%s1558_s29 + $0x20] sm:$0xff] %vm596_vm1, %v584_v61  ;;  %609 = vst.msk [vmem:[%s1558_s29 + $0x60] sm:$0xff] %vm596_vm1, %v592_v62  ;;  %v587_v3 = vadd.f32 %v1162_v63, %v410_v59  ;;  %v595_v4 = vadd.f32 %v1170_v0, %v418_v60  ;;  %616 = sbr.rel (%p1083_p6) target bundleno = 476 (0x1dc), region = 82 }
 0x136   : > { %v536_v5 = vpop.f32.mrf.mxu0  ;;  %v568_v6 = vpop.f32.mrf.mxu1 }
 0x137   : > { %604 = vst.msk [vmem:[%s1558_s29 + $0x38] sm:$0xff] %vm596_vm1, %v587_v3  ;;  %612 = vst.msk [vmem:[%s1558_s29 + $0x78] sm:$0xff] %vm596_vm1, %v595_v4  ;;  %v585_v7 = vadd.f32 %v536_v5, %v408_v1  ;;  %v593_v8 = vadd.f32 %v568_v6, %v416_v2 }
 0x139   : > { %602 = vst.msk [vmem:[%s1558_s29 + $0x28] sm:$0xff] %vm596_vm1, %v585_v7  ;;  %610 = vst.msk [vmem:[%s1558_s29 + $0x68] sm:$0xff] %vm596_vm1, %v593_v8 }
 0x13a   : > { %v619_v9 = vld [vmem:[%s1553_s25 + $0x10] sm:$0xff]  ;;  %v617_v10 = vld [vmem:[%s1553_s25] sm:$0xff]  ;;  %v1399_v11 = vmov 0   ;;  %v620_v12 = vld [vmem:[%s1553_s25 + $0x18] sm:$0xff]  ;;  %vm873_vm2 = vcmask 257024  }
 0x13b   : > { %1287 = vset.pattern.permute.xlu1 %v1399_v11  ;;  %1286 = vset.pattern.permute.xlu0 %v1399_v11  ;;  %v618_v13 = vld [vmem:[%s1553_s25 + $0x8] sm:$0xff]  ;;  %v621_v15 = vld [vmem:[%s1553_s25 + $0x20] sm:$0xff]  ;;  %v624_v16 = vld [vmem:[%s1553_s25 + $0x38] sm:$0xff] }
 0x13c   : > { %661 = vperm.xlu1 %1287, %v619_v9   ;;  %651 = vperm.xlu0 %1286, %v617_v10   ;;  %v622_v14 = vld [vmem:[%s1553_s25 + $0x28] sm:$0xff]  ;;  %v623_v17 = vld [vmem:[%s1553_s25 + $0x30] sm:$0xff]  ;;  %v625_v19 = vld [vmem:[%s1553_s25 + $0x40] sm:$0xff] }
 0x13d   : > { %v626_v18 = vld [vmem:[%s1553_s25 + $0x48] sm:$0xff]  ;;  %v628_v20 = vld [vmem:[%s1553_s25 + $0x58] sm:$0xff]  ;;  %v627_v21 = vld [vmem:[%s1553_s25 + $0x50] sm:$0xff] }
 0x13e   : > { %v630_v22 = vld [vmem:[%s1553_s25 + $0x68] sm:$0xff]  ;;  %v629_v23 = vld [vmem:[%s1553_s25 + $0x60] sm:$0xff]  ;;  %v632_v24 = vld [vmem:[%s1553_s25 + $0x78] sm:$0xff] }
 0x13f   : > { %v631_v25 = vld [vmem:[%s1553_s25 + $0x70] sm:$0xff]  ;;  %v633_v27 = vld [vmem:[%s1558_s29] sm:$0xff]  ;;  %v636_v32 = vld [vmem:[%s1558_s29 + $0x18] sm:$0xff] }
 0x140   : > { %666 = vperm.xlu1 %1287, %v620_v12   ;;  %656 = vperm.xlu0 %1286, %v618_v13   ;;  %v635_v26 = vld [vmem:[%s1558_s29 + $0x10] sm:$0xff]  ;;  %v745_v29 = vld [vmem:[%s1548_s21] sm:$0xff]  ;;  %v748_v33 = vld [vmem:[%s1548_s21 + $0x18] sm:$0xff] }
 0x141   : > { %v747_v28 = vld [vmem:[%s1548_s21 + $0x10] sm:$0xff]  ;;  %v634_v34 = vld [vmem:[%s1558_s29 + $0x8] sm:$0xff]  ;;  %v749_v37 = vld [vmem:[%s1548_s21 + $0x20] sm:$0xff] }
 0x142   : > { %v746_v35 = vld [vmem:[%s1548_s21 + $0x8] sm:$0xff]  ;;  %v752_v38 = vld [vmem:[%s1548_s21 + $0x38] sm:$0xff]  ;;  %v751_v39 = vld [vmem:[%s1548_s21 + $0x30] sm:$0xff] }
 0x143   : > { %v750_v36 = vld [vmem:[%s1548_s21 + $0x28] sm:$0xff]  ;;  %v1690_v41 = vld [vmem:[%s1548_s21 + $0x40] sm:$0xff]  ;;  %v1693_v44 = vld [vmem:[%s1548_s21 + $0x58] sm:$0xff] }
 0x144   : > { %676 = vperm.xlu1 %1287, %v622_v14   ;;  %671 = vperm.xlu0 %1286, %v621_v15   ;;  %v1687_v40 = vld [vmem:[%s1548_s21 + $0x48] sm:$0xff]  ;;  %v1696_v45 = vld [vmem:[%s1548_s21 + $0x50] sm:$0xff]  ;;  %v1702_v47 = vld [vmem:[%s1548_s21 + $0x60] sm:$0xff] }
 0x145   : > { %v1699_v46 = vld [vmem:[%s1548_s21 + $0x68] sm:$0xff]  ;;  %v1705_v48 = vld [vmem:[%s1548_s21 + $0x78] sm:$0xff]  ;;  %v1708_v49 = vld [vmem:[%s1548_s21 + $0x70] sm:$0xff] }
 0x146   : > { %v638_v60 = vld [vmem:[%s1558_s29 + $0x28] sm:$0xff]  ;;  %v637_v61 = vld [vmem:[%s1558_s29 + $0x20] sm:$0xff]  ;;  %v640_v8 = vld [vmem:[%s1558_s29 + $0x38] sm:$0xff] }
 0x147   : > { %v639_v9 = vld [vmem:[%s1558_s29 + $0x30] sm:$0xff] }
 0x148   : > { %686 = vperm.xlu1 %1287, %v624_v16   ;;  %681 = vperm.xlu0 %1286, %v623_v17  }
 0x14c   : > { %696 = vperm.xlu1 %1287, %v626_v18   ;;  %691 = vperm.xlu0 %1286, %v625_v19  }
 0x150   : > { %706 = vperm.xlu1 %1287, %v628_v20   ;;  %701 = vperm.xlu0 %1286, %v627_v21   ;;  %v642_v20 = vld [vmem:[%s1558_s29 + $0x48] sm:$0xff]  ;;  %v641_v21 = vld [vmem:[%s1558_s29 + $0x40] sm:$0xff] }
 0x154   : > { %716 = vperm.xlu1 %1287, %v630_v22   ;;  %711 = vperm.xlu0 %1286, %v629_v23  }
 0x158   : > { %726 = vperm.xlu1 %1287, %v632_v24   ;;  %721 = vperm.xlu0 %1286, %v631_v25  }
 0x1b7   : > { %v662_v30 = vpop.permute.xlu1 %661  ;;  %v652_v31 = vpop.permute.xlu0 %651 }
 0x1b8   : > { %v731_v42 = vmul.f32 %v662_v30, %v635_v26  ;;  %v729_v43 = vmul.f32 %v652_v31, %v633_v27 }
 0x1ba   : > { %v763_v50 = vadd.f32 %v747_v28, %v731_v42  ;;  %v795_v51 = vmul.f32 %v731_v42, %v662_v30  ;;  %v761_v52 = vadd.f32 %v745_v29, %v729_v43  ;;  %v793_v53 = vmul.f32 %v729_v43, %v652_v31 }
 0x1bb   : > { %v667_v54 = vpop.permute.xlu1 %666  ;;  %v657_v55 = vpop.permute.xlu0 %656 }
 0x1bc   : > { %v1108_v56 = vpack.c.bf16 %v795_v51, %v795_v51  ;;  %v1106_v57 = vpack.c.bf16 %v793_v53, %v793_v53  ;;  %v732_v58 = vmul.f32 %v667_v54, %v636_v32  ;;  %v730_v59 = vmul.f32 %v657_v55, %v634_v34  ;;  %777 = vst.msk [vmem:[%s1558_s29] sm:$0xff] %vm596_vm1, %v761_v52  ;;  %v644_v32 = vld [vmem:[%s1558_s29 + $0x58] sm:$0xff]  ;;  %v646_v52 = vld [vmem:[%s1558_s29 + $0x68] sm:$0xff]  ;;  %v645_v53 = vld [vmem:[%s1558_s29 + $0x60] sm:$0xff] }
 0x1bd   : > { %779 = vst.msk [vmem:[%s1558_s29 + $0x10] sm:$0xff] %vm596_vm1, %v763_v50 }
 0x1be   : > { %876 = vst.msk [vmem:[%s1562_s12 + $0x8] sm:$0xf] %vm873_vm2, %v1108_v56  ;;  %874 = vst.msk [vmem:[%s1562_s12] sm:$0xf] %vm873_vm2, %v1106_v57  ;;  %v764_v62 = vadd.f32 %v748_v33, %v732_v58  ;;  %v796_v63 = vmul.f32 %v732_v58, %v667_v54  ;;  %v762_v0 = vadd.f32 %v746_v35, %v730_v59  ;;  %v643_v33 = vld [vmem:[%s1558_s29 + $0x50] sm:$0xff] }
 0x1bf   : > { %v794_v1 = vmul.f32 %v730_v59, %v657_v55  ;;  %v677_v2 = vpop.permute.xlu1 %676  ;;  %v672_v3 = vpop.permute.xlu0 %671 }
 0x1c0   : > { %v1109_v4 = vpack.c.bf16 %v796_v63, %v796_v63  ;;  %v734_v6 = vmul.f32 %v677_v2, %v638_v60  ;;  %v733_v7 = vmul.f32 %v672_v3, %v637_v61  ;;  %778 = vst.msk [vmem:[%s1558_s29 + $0x8] sm:$0xff] %vm596_vm1, %v762_v0  ;;  %780 = vst.msk [vmem:[%s1558_s29 + $0x18] sm:$0xff] %vm596_vm1, %v764_v62  ;;  %v648_v62 = vld [vmem:[%s1558_s29 + $0x78] sm:$0xff]  ;;  %v647_v63 = vld [vmem:[%s1558_s29 + $0x70] sm:$0xff] }
 0x1c1   : > { %v1107_v5 = vpack.c.bf16 %v794_v1, %v794_v1 }
 0x1c2   : > { %877 = vst.msk [vmem:[%s1562_s12 + $0xc] sm:$0xf] %vm873_vm2, %v1109_v4  ;;  %v766_v10 = vadd.f32 %v750_v36, %v734_v6  ;;  %v798_v11 = vmul.f32 %v734_v6, %v677_v2  ;;  %v765_v12 = vadd.f32 %v749_v37, %v733_v7  ;;  %v797_v13 = vmul.f32 %v733_v7, %v672_v3 }
 0x1c3   : > { %875 = vst.msk [vmem:[%s1562_s12 + $0x4] sm:$0xf] %vm873_vm2, %v1107_v5  ;;  %v687_v14 = vpop.permute.xlu1 %686  ;;  %v682_v15 = vpop.permute.xlu0 %681 }
 0x1c4   : > { %v1111_v16 = vpack.c.bf16 %v798_v11, %v798_v11  ;;  %v1110_v17 = vpack.c.bf16 %v797_v13, %v797_v13  ;;  %v736_v18 = vmul.f32 %v687_v14, %v640_v8  ;;  %v735_v19 = vmul.f32 %v682_v15, %v639_v9  ;;  %781 = vst.msk [vmem:[%s1558_s29 + $0x20] sm:$0xff] %vm596_vm1, %v765_v12 }
 0x1c5   : > { %782 = vst.msk [vmem:[%s1558_s29 + $0x28] sm:$0xff] %vm596_vm1, %v766_v10 }
 0x1c6   : > { %879 = vst.msk [vmem:[%s1562_s12 + $0x14] sm:$0xf] %vm873_vm2, %v1111_v16  ;;  %878 = vst.msk [vmem:[%s1562_s12 + $0x10] sm:$0xf] %vm873_vm2, %v1110_v17  ;;  %v768_v22 = vadd.f32 %v752_v38, %v736_v18  ;;  %v800_v23 = vmul.f32 %v736_v18, %v687_v14  ;;  %v767_v24 = vadd.f32 %v751_v39, %v735_v19 }
 0x1c7   : > { %v799_v25 = vmul.f32 %v735_v19, %v682_v15  ;;  %v697_v26 = vpop.permute.xlu1 %696  ;;  %v692_v27 = vpop.permute.xlu0 %691 }
 0x1c8   : > { %v1113_v28 = vpack.c.bf16 %v800_v23, %v800_v23  ;;  %v738_v30 = vmul.f32 %v697_v26, %v642_v20  ;;  %v737_v31 = vmul.f32 %v692_v27, %v641_v21  ;;  %783 = vst.msk [vmem:[%s1558_s29 + $0x30] sm:$0xff] %vm596_vm1, %v767_v24  ;;  %784 = vst.msk [vmem:[%s1558_s29 + $0x38] sm:$0xff] %vm596_vm1, %v768_v22 }
 0x1c9   : > { %v1112_v29 = vpack.c.bf16 %v799_v25, %v799_v25 }
 0x1ca   : > { %881 = vst.msk [vmem:[%s1562_s12 + $0x1c] sm:$0xf] %vm873_vm2, %v1113_v28  ;;  %v770_v34 = vadd.f32 %v1687_v40, %v738_v30  ;;  %v802_v35 = vmul.f32 %v738_v30, %v697_v26  ;;  %v769_v36 = vadd.f32 %v1690_v41, %v737_v31  ;;  %v801_v37 = vmul.f32 %v737_v31, %v692_v27 }
 0x1cb   : > { %880 = vst.msk [vmem:[%s1562_s12 + $0x18] sm:$0xf] %vm873_vm2, %v1112_v29  ;;  %v707_v38 = vpop.permute.xlu1 %706  ;;  %v702_v39 = vpop.permute.xlu0 %701 }
 0x1cc   : > { %v1115_v42 = vpack.c.bf16 %v802_v35, %v802_v35  ;;  %v1114_v43 = vpack.c.bf16 %v801_v37, %v801_v37  ;;  %v740_v50 = vmul.f32 %v707_v38, %v644_v32  ;;  %v739_v51 = vmul.f32 %v702_v39, %v643_v33  ;;  %785 = vst.msk [vmem:[%s1558_s29 + $0x40] sm:$0xff] %vm596_vm1, %v769_v36 }
 0x1cd   : > { %786 = vst.msk [vmem:[%s1558_s29 + $0x48] sm:$0xff] %vm596_vm1, %v770_v34 }
 0x1ce   : > { %883 = vst.msk [vmem:[%s1562_s12 + $0x24] sm:$0xf] %vm873_vm2, %v1115_v42  ;;  %882 = vst.msk [vmem:[%s1562_s12 + $0x20] sm:$0xf] %vm873_vm2, %v1114_v43  ;;  %v772_v40 = vadd.f32 %v1693_v44, %v740_v50  ;;  %v804_v41 = vmul.f32 %v740_v50, %v707_v38  ;;  %v771_v54 = vadd.f32 %v1696_v45, %v739_v51 }
 0x1cf   : > { %v803_v55 = vmul.f32 %v739_v51, %v702_v39  ;;  %v717_v56 = vpop.permute.xlu1 %716  ;;  %v712_v57 = vpop.permute.xlu0 %711 }
 0x1d0   : > { %v1117_v58 = vpack.c.bf16 %v804_v41, %v804_v41  ;;  %v742_v60 = vmul.f32 %v717_v56, %v646_v52  ;;  %v741_v61 = vmul.f32 %v712_v57, %v645_v53  ;;  %787 = vst.msk [vmem:[%s1558_s29 + $0x50] sm:$0xff] %vm596_vm1, %v771_v54  ;;  %788 = vst.msk [vmem:[%s1558_s29 + $0x58] sm:$0xff] %vm596_vm1, %v772_v40 }
 0x1d1   : > { %v1116_v59 = vpack.c.bf16 %v803_v55, %v803_v55 }
 0x1d2   : > { %885 = vst.msk [vmem:[%s1562_s12 + $0x2c] sm:$0xf] %vm873_vm2, %v1117_v58  ;;  %v774_v44 = vadd.f32 %v1699_v46, %v742_v60  ;;  %v806_v45 = vmul.f32 %v742_v60, %v717_v56  ;;  %v773_v0 = vadd.f32 %v1702_v47, %v741_v61  ;;  %v805_v1 = vmul.f32 %v741_v61, %v712_v57 }
 0x1d3   : > { %884 = vst.msk [vmem:[%s1562_s12 + $0x28] sm:$0xf] %vm873_vm2, %v1116_v59  ;;  %v727_v2 = vpop.permute.xlu1 %726  ;;  %v722_v3 = vpop.permute.xlu0 %721 }
 0x1d4   : > { %v1119_v4 = vpack.c.bf16 %v806_v45, %v806_v45  ;;  %v1118_v5 = vpack.c.bf16 %v805_v1, %v805_v1  ;;  %v744_v6 = vmul.f32 %v727_v2, %v648_v62  ;;  %789 = vst.msk [vmem:[%s1558_s29 + $0x60] sm:$0xff] %vm596_vm1, %v773_v0  ;;  %790 = vst.msk [vmem:[%s1558_s29 + $0x68] sm:$0xff] %vm596_vm1, %v774_v44 }
 0x1d5   : > { %v743_v7 = vmul.f32 %v722_v3, %v647_v63 }
 0x1d6   : > { %887 = vst.msk [vmem:[%s1562_s12 + $0x34] sm:$0xf] %vm873_vm2, %v1119_v4  ;;  %886 = vst.msk [vmem:[%s1562_s12 + $0x30] sm:$0xf] %vm873_vm2, %v1118_v5  ;;  %v776_v46 = vadd.f32 %v1705_v48, %v744_v6  ;;  %v808_v47 = vmul.f32 %v744_v6, %v727_v2 }
 0x1d7   : > { %v775_v8 = vadd.f32 %v1708_v49, %v743_v7  ;;  %v807_v9 = vmul.f32 %v743_v7, %v722_v3 }
 0x1d8   : > { %v1121_v10 = vpack.c.bf16 %v808_v47, %v808_v47  ;;  %792 = vst.msk [vmem:[%s1558_s29 + $0x78] sm:$0xff] %vm596_vm1, %v776_v46 }
 0x1d9   : > { %791 = vst.msk [vmem:[%s1558_s29 + $0x70] sm:$0xff] %vm596_vm1, %v775_v8  ;;  %v1120_v11 = vpack.c.bf16 %v807_v9, %v807_v9 }
 0x1da   : > { %889 = vst.msk [vmem:[%s1562_s12 + $0x3c] sm:$0xf] %vm873_vm2, %v1121_v10 }
 0x1db   : > { %888 = vst.msk [vmem:[%s1562_s12 + $0x38] sm:$0xf] %vm873_vm2, %v1120_v11 }
 0x1dc PF: > { %s1122_s0 = sshll.u32 %s1384_s24, 10  ;;  %s909_s26 = sshll.u32 %s1562_s12, 4  ;;  %s1801_s26 = int_to_ptr.vmem [resolvable:$true] %s909_s26 }
 0x1dd   : > { %s1798_s25 = scalar_lea.hbm %s1866_s4, %s1122_s0  ;;  %s1886_s30 = sand.u32 1, %s1364_s19  }
 0x1de   : > { %s1805_s15 = scalar_lea.sflag [#allocation4], %s1886_s30  ;;  %s1288_s16 = scalar_lea.vmem %s1801_s26, 1024 }
 0x1df   : > { %p1289_p8 = scmp.ne.s32.totalorder %s1801_s26, %s1288_s16  ;;  %s1400_s24 = smov [#allocation3]  }
 0x1e0   : > { %s1292_s9 = sshll.u32 %s1400_s24, 4  ;;  %s1293_s9 = int_to_ptr.vmem [resolvable:$false] %s1292_s9 }
 0x1e1   : > { %p1290_p9 = pnand %p1289_p8, %p1505_p7  ;;  %s1294_s17 = scalar_lea.vmem %s1293_s9, 2048 }
 0x1e2   : > { %p1295_p11 = scmp.lt.s32.totalorder %s1801_s26, %s1293_s9  ;;  %p1296_p13 = scmp.lt.s32.totalorder %s1294_s17, %s1288_s16 }
 0x1e3   : > { %p1291_p10 = pneg %p1290_p9 }
 0x1e4   : > { %p1297_p0 = por %p1296_p13, %p1295_p11 }
 0x1e6   : > { %p1298_p1 = pnand %p1297_p0, %p1291_p10 }
 0x1e8   : > { %1301 = shalt.err (!%p1298_p1)
}
 0x1e9   : > { %s1302_s28 = scalar_lea.hbm %s1798_s25, 1024  ;;  %s1306_s10 = scalar_lea.hbm %s1866_s4, 2048 }
 0x1ea   : > { %p1303_p2 = scmp.ne.s32.totalorder %s1798_s25, %s1302_s28  ;;  %p1307_p5 = scmp.lt.s32.totalorder %s1798_s25, %s1866_s4 }
 0x1eb   : > { %p1308_p6 = scmp.lt.s32.totalorder %s1306_s10, %s1302_s28 }
 0x1ec   : > { %p1304_p3 = pnand %p1303_p2, %p1505_p7 }
 0x1ed   : > { %p1309_p8 = por %p1308_p6, %p1307_p5 }
 0x1ee   : > { %p1305_p4 = pneg %p1304_p3 }
 0x1f0   : > { %p1310_p9 = pnand %p1309_p8, %p1305_p4 }
 0x1f2   : > { %1313 = shalt.err (!%p1310_p9)
}
 0x1f3   : > { %s1401_s6 = smov 64   ;;  %s1402_s29 = smov 4  }
 0x1f4   : > { %1187 = dma.vmem_to_hbm [thread:$0]  (%p1505_p7), %s1801_s26, 1024, %s1798_s25, %s1805_s15, %s1401_s6, %s1401_s6, %s1402_s29  }
 0x1f5 PF: > { %p1193_p10 = scmp.ge.s32.totalorder %s1396_s27, 2  ;;  %s928_s12 = sand.u32 1, %s1360_s18  }
 0x1f6   : > { %s929_s0 = scalar_lea.sflag [#allocation4], %s928_s12 }
 0x1f7   : > { %p1190_p11 = pnand %p1193_p10, %p1513_p12 }
 0x1f9   : > { %p1191_p13 = pneg %p1190_p11 }
 0x1fb   : > { %1355 = dma.done.wait (%p1191_p13), %s929_s0, 1024  }
 0x1fc   : > { %1357 = vsyncadd (%p1191_p13), %s929_s0, 4294966272  ;;  %s19_s27 = sadd.s32 1, %s1396_s27   ;;  %s1887_s22 = sld [smem:[#allocation11_spill]] }
 0x1fd   : > { %p16_p0 = scmp.ge.s32.totalorder %s19_s27, 6   ;;  %s1888_s21 = sld [smem:[#allocation6_spill]] }
 0x1fe   : > { %s1889_s11 = sld [smem:[#allocation12_spill]]  ;;  %s1894_s18 = smov %s1364_s19 }
 0x1ff   : > { %s1890_s23 = sld [smem:[#allocation7_spill]]  ;;  %s1895_s19 = smov %s1368_s20 }
 0x200   : > { %s1891_s24 = sld [smem:[#allocation8_spill]]  ;;  %18 = sbr.rel (!%p16_p0) target bundleno = 8 (0x8), region = 143 }
 0x201   : > { %s1892_s25 = sld [smem:[#allocation9_spill]] }
 0x202   : > { %s1893_s26 = sld [smem:[#allocation10_spill]]  ;;  %s1896_s20 = smov %s1887_s22 }
 0x204   : > { %s1897_s22 = smov %s1889_s11 }
 0x205   :  { %942 = vsyncpa [#allocation4], 1 }
 0x206   :  { %944 = vsyncpa [#allocation4 + $0x1], 1 }

</bundles_post_ra>
